<compile_context>
chip_gen: v5e
topology: v5e:2x2
jax: 0.10.0
libtpu: 0.0.40
codegen_flags: <defaults>
</compile_context>

<pallas_src>
import math

import jax
import jax.numpy as jnp
import numpy as np
from jax.experimental import pallas as pl
from jax.experimental.pallas import tpu as pltpu


# ----------------------------------------------------------------------------
# Host-side precompute: dense bilinear-rotation matrix R so that out_flat = R @ in_flat
# (rotation about the image centre, bilinear interpolation, zero fill).
# Built with a numpy scatter-add: no hw x hw one-hot intermediates in XLA.
# ----------------------------------------------------------------------------
def build_rotation_matrix_np(h, w, angle_deg):
    theta = math.radians(float(angle_deg))
    cy = (h - 1) / 2.0
    cx = (w - 1) / 2.0
    yo, xo = np.meshgrid(np.arange(h, dtype=np.float64),
                         np.arange(w, dtype=np.float64), indexing="ij")
    dx = xo - cx
    dy = yo - cy
    c = math.cos(theta)
    s = math.sin(theta)
    # source (sampling) coordinates for each output pixel
    xs = c * dx + s * dy + cx
    ys = -s * dx + c * dy + cy

    x0 = np.floor(xs)
    y0 = np.floor(ys)
    x1 = x0 + 1.0
    y1 = y0 + 1.0
    wx = xs - x0
    wy = ys - y0

    hw = h * w
    rows = np.arange(hw, dtype=np.int64)
    R = np.zeros((hw, hw), dtype=np.float32)
    corners = [
        (y0, x0, (1.0 - wy) * (1.0 - wx)),
        (y0, x1, (1.0 - wy) * wx),
        (y1, x0, wy * (1.0 - wx)),
        (y1, x1, wy * wx),
    ]
    for yi, xi, wgt in corners:
        valid = (xi >= 0) & (xi <= w - 1) & (yi >= 0) & (yi <= h - 1)
        xi_c = np.clip(xi, 0, w - 1).astype(np.int64)
        yi_c = np.clip(yi, 0, h - 1).astype(np.int64)
        idx = (yi_c * w + xi_c).reshape(-1)
        wflat = (wgt * valid).reshape(-1).astype(np.float32)
        np.add.at(R, (rows, idx), wflat)        # scatter-add of the 4 bilinear taps
    return R


# ----------------------------------------------------------------------------
# Pallas kernel: one fused spatial matmul (rotate -> inverse-rotate -> crop composed)
# plus the block-diagonal 1x1-conv channel mix and its folded bias.
# ----------------------------------------------------------------------------
def _fused_kernel(xm_ref, wblk_ref, rcomb_ref, beff_ref, o_ref):
    # xm_ref:    (BC, hw)       reflect-padded input, batch*channel rows
    # wblk_ref:  (BC, BC)       block-diagonal 1x1-conv weights
    # rcomb_ref: (hw, tile_n)   composed (rotate @ inverse-rotate @ crop) matrix tile
    # beff_ref:  (BC, tile_n)   conv bias pushed through the inverse rotation + crop
    # o_ref:     (BC, tile_n)
    #
    # NOTE on precision: HIGHEST (exact f32) is kept deliberately.  After the fusion the
    # kernel is DMA-bound (one 512 KiB Rcomb tile per step vs ~1 MFLOP of matmul), so the
    # extra MXU passes are hidden, and it keeps the 1e-3 check against the exact-f32
    # reference comfortable.  (Mosaic's dot lowering portably supports DEFAULT/HIGHEST;
    # HIGH/bf16x3 is not guaranteed, and plain bf16 would be borderline at 1e-3.)
    rot = jnp.dot(xm_ref[...], rcomb_ref[...],
                  preferred_element_type=jnp.float32,
                  precision=jax.lax.Precision.HIGHEST)            # (BC, tile_n)
    o_ref[...] = jnp.dot(wblk_ref[...], rot,
                         preferred_element_type=jnp.float32,
                         precision=jax.lax.Precision.HIGHEST) + beff_ref[...]


def learnable_spatial_transform_forward(x, angle_deg, conv_w, conv_b, pad_coef=0.5):
    """x: (B, C, H, W) float32 -> (B, C, H, W) float32."""
    B, C, H, W = x.shape
    pad_h, pad_w = int(H * pad_coef), int(W * pad_coef)

    # reflect pad (PyTorch F.pad mode='reflect' == jnp.pad mode='reflect')
    xp = jnp.pad(x, ((0, 0), (0, 0), (pad_h, pad_h), (pad_w, pad_w)), mode="reflect")
    Hp, Wp = H + 2 * pad_h, W + 2 * pad_w
    hw = Hp * Wp
    HW = H * W
    BC = B * C

    # --- host-side precompute (angle is concrete outside jit in this script) ------------
    ang = float(angle_deg)
    Rf = build_rotation_matrix_np(Hp, Wp, ang)       # forward rotation   (hw, hw)
    Ri = build_rotation_matrix_np(Hp, Wp, -ang)      # inverse rotation   (hw, hw)

    # flattened indices of the crop window of the inverse-rotated image
    rows_c = np.arange(pad_h, Hp - pad_h)
    cols_c = np.arange(pad_w, Wp - pad_w)
    crop_idx = (rows_c[:, None] * Wp + cols_c[None, :]).reshape(-1)      # (HW,)
    Ri_crop = Ri[crop_idx, :]                                            # (HW, hw)

    # Compose rotate -> inverse-rotate -> crop into one matrix:  x_flat @ Rcomb
    Rcomb = np.ascontiguousarray((Ri_crop @ Rf).T, dtype=np.float32)     # (hw, HW)
    # Conv bias pushed through the inverse rotation + crop:  b (x) rowsum(Ri_crop)
    b_eff = (np.asarray(conv_b, np.float32).reshape(C, 1)
             * Ri_crop.sum(axis=1)[None, :]).astype(np.float32)          # (C, HW)

    # Block-diagonal channel-mix over the folded (B*C) rows.
    wblk_np = np.kron(np.eye(B, dtype=np.float32),
                      np.asarray(conv_w, np.float32))                    # (BC, BC)

    xm = xp.reshape(BC, hw)
    rcomb = jnp.asarray(Rcomb)
    wblk = jnp.asarray(wblk_np)
    beff = jnp.asarray(np.tile(b_eff, (B, 1)))                           # (BC, HW)

    # 2 lane-dense output tiles (128 cols each) -> parallel grid axis for v7x's 2 TCs.
    n_tiles = 2 if (HW % 256 == 0) else 1
    tile_n = HW // n_tiles

    cost = pl.CostEstimate(
        flops=2 * BC * hw * HW + 2 * BC * BC * HW,
        transcendentals=0,
        bytes_accessed=4 * (BC * hw + BC * BC + hw * HW + 2 * BC * HW),
    )

    out_flat = pl.pallas_call(
        _fused_kernel,
        out_shape=jax.ShapeDtypeStruct((BC, HW), jnp.float32),
        grid_spec=pltpu.PrefetchScalarGridSpec(
            num_scalar_prefetch=0,
            grid=(n_tiles,),
            in_specs=[
                pl.BlockSpec((BC, hw), lambda j: (0, 0)),        # x: resident across steps
                pl.BlockSpec((BC, BC), lambda j: (0, 0)),        # block-diag conv weights
                pl.BlockSpec((hw, tile_n), lambda j: (0, j)),    # composed rotation tile
                pl.BlockSpec((BC, tile_n), lambda j: (0, j)),    # folded bias tile
            ],
            out_specs=pl.BlockSpec((BC, tile_n), lambda j: (0, j)),
        ),
        compiler_params=pltpu.CompilerParams(
            dimension_semantics=("parallel",),
        ),
        cost_estimate=cost,
    )(xm, wblk, rcomb, beff)

    return out_flat.reshape(B, C, H, W)


# ----------------------------------------------------------------------------
# Pure-JAX reference: the UNFUSED pipeline (pad -> rotate -> conv -> rotate back -> crop),
# exact f32, to validate both the kernel and the host-side fusion algebra.
# ----------------------------------------------------------------------------
def reference_forward(x, angle_deg, conv_w, conv_b, pad_coef=0.5):
    B, C, H, W = x.shape
    pad_h, pad_w = int(H * pad_coef), int(W * pad_coef)
    xp = jnp.pad(x, ((0, 0), (0, 0), (pad_h, pad_h), (pad_w, pad_w)), mode="reflect")
    Hp, Wp = H + 2 * pad_h, W + 2 * pad_w
    hw = Hp * Wp
    Rf = jnp.asarray(build_rotation_matrix_np(Hp, Wp, float(angle_deg)))
    Ri = jnp.asarray(build_rotation_matrix_np(Hp, Wp, -float(angle_deg)))
    x_flat = xp.reshape(B, C, hw)
    hi = jax.lax.Precision.HIGHEST
    r = jnp.einsum("bci,oi->bco", x_flat, Rf, precision=hi)                 # rotate
    z = jnp.einsum("oc,bci->boi", conv_w, r, precision=hi) + conv_b[None, :, None]
    y = jnp.einsum("bci,oi->bco", z, Ri, precision=hi)                      # inverse rotate
    yp = y.reshape(B, C, Hp, Wp)
    return yp[:, :, pad_h:Hp - pad_h, pad_w:Wp - pad_w]                     # crop


if __name__ == "__main__":
    key = jax.random.PRNGKey(0)
    k_x, k_ang, k_w, k_b = jax.random.split(key, 4)

    B, C, H, W = 2, 4, 16, 16
    x = jax.random.normal(k_x, (B, C, H, W), dtype=jnp.float32)

    # angle = torch.rand(1) * angle_init_range  (angle_init_range=80), deterministic here
    angle_deg = jax.random.uniform(k_ang, (), dtype=jnp.float32) * 80.0

    # synthetic `impl`: 1x1 conv (pointwise channel mix) with deterministic weights
    conv_w = jax.random.normal(k_w, (C, C), dtype=jnp.float32) * 0.5
    conv_b = jax.random.normal(k_b, (C,), dtype=jnp.float32) * 0.1

    out = learnable_spatial_transform_forward(x, angle_deg, conv_w, conv_b)
    out = jax.block_until_ready(out)

    ref = jax.block_until_ready(reference_forward(x, angle_deg, conv_w, conv_b))

    assert out.shape == (B, C, H, W), out.shape
    max_err = float(np.max(np.abs(np.asarray(out) - np.asarray(ref))))
    assert np.allclose(np.asarray(out), np.asarray(ref), atol=1e-3, rtol=1e-3), max_err
    print("KERNEL_OK")
</pallas_src>

<mosaic_0001>
module attributes {stable_mosaic.version = 11 : i64} {
  func.func @_fused_kernel(%arg0: i32, %arg1: memref<8x1024xf32, #tpu.memory_space<vmem>>, %arg2: memref<8x8xf32, #tpu.memory_space<vmem>>, %arg3: memref<1024x128xf32, #tpu.memory_space<vmem>>, %arg4: memref<8x128xf32, #tpu.memory_space<vmem>>, %arg5: memref<8x128xf32, #tpu.memory_space<vmem>>) attributes {dimension_semantics = [#tpu.dimension_semantics<parallel>], iteration_bounds = array<i64: 2>, scalar_prefetch = 0 : i64, scratch_operands = 0 : i64, tpu.core_type = #tpu.core_type<tc>, window_params = [{pipeline_mode = #tpu.pipeline_mode<synchronous>, transform_indices = @transform_0, window_bounds = array<i64: 8, 1024>}, {pipeline_mode = #tpu.pipeline_mode<synchronous>, transform_indices = @transform_1, window_bounds = array<i64: 8, 8>}, {transform_indices = @transform_2, window_bounds = array<i64: 1024, 128>}, {transform_indices = @transform_3, window_bounds = array<i64: 8, 128>}, {transform_indices = @transform_4, window_bounds = array<i64: 8, 128>}]} {
    %c0 = arith.constant 0 : index
    %c0_0 = arith.constant 0 : index
    %0 = vector.load %arg1[%c0, %c0_0] : memref<8x1024xf32, #tpu.memory_space<vmem>>, vector<8x1024xf32>
    %c0_1 = arith.constant 0 : index
    %c0_2 = arith.constant 0 : index
    %1 = vector.load %arg3[%c0_1, %c0_2] : memref<1024x128xf32, #tpu.memory_space<vmem>>, vector<1024x128xf32>
    %cst = arith.constant dense<0.000000e+00> : vector<8x128xf32>
    %2 = tpu.matmul %0, %1, %cst {dimension_numbers = #tpu.dot_dimension_numbers<[1], [0], [0], [1], [0, 0, 1, 1], [], []>, precision = #tpu.contract_precision<fp32>} : vector<8x1024xf32>, vector<1024x128xf32>, vector<8x128xf32> -> vector<8x128xf32>
    %c0_3 = arith.constant 0 : index
    %c0_4 = arith.constant 0 : index
    %3 = vector.load %arg2[%c0_3, %c0_4] : memref<8x8xf32, #tpu.memory_space<vmem>>, vector<8x8xf32>
    %cst_5 = arith.constant dense<0.000000e+00> : vector<8x128xf32>
    %4 = tpu.matmul %3, %2, %cst_5 {dimension_numbers = #tpu.dot_dimension_numbers<[1], [0], [0], [1], [0, 0, 1, 1], [], []>, precision = #tpu.contract_precision<fp32>} : vector<8x8xf32>, vector<8x128xf32>, vector<8x128xf32> -> vector<8x128xf32>
    %c0_6 = arith.constant 0 : index
    %c0_7 = arith.constant 0 : index
    %5 = vector.load %arg4[%c0_6, %c0_7] : memref<8x128xf32, #tpu.memory_space<vmem>>, vector<8x128xf32>
    %6 = arith.addf %4, %5 : vector<8x128xf32>
    %c0_8 = arith.constant 0 : index
    %c0_9 = arith.constant 0 : index
    %7 = vector.load %arg5[%c0_8, %c0_9] : memref<8x128xf32, #tpu.memory_space<vmem>>, vector<8x128xf32>
    tpu.vector_store %arg5[%c0_8, %c0_9], %6 {strides = array<i32>} : memref<8x128xf32, #tpu.memory_space<vmem>>, vector<8x128xf32>,
    return
  }
  func.func @transform_0(%arg0: i32) -> (i32, i32) {
    %c0_i32 = arith.constant 0 : i32
    %c0_i32_0 = arith.constant 0 : i32
    %c0_i32_1 = arith.constant 0 : i32
    return %c0_i32, %c0_i32_0 : i32, i32
  }
  func.func @transform_1(%arg0: i32) -> (i32, i32) {
    %c0_i32 = arith.constant 0 : i32
    %c0_i32_0 = arith.constant 0 : i32
    %c0_i32_1 = arith.constant 0 : i32
    return %c0_i32, %c0_i32_0 : i32, i32
  }
  func.func @transform_2(%arg0: i32) -> (i32, i32) {
    %c0_i32 = arith.constant 0 : i32
    %c0_i32_0 = arith.constant 0 : i32
    return %c0_i32, %arg0 : i32, i32
  }
  func.func @transform_3(%arg0: i32) -> (i32, i32) {
    %c0_i32 = arith.constant 0 : i32
    %c0_i32_0 = arith.constant 0 : i32
    return %c0_i32, %arg0 : i32, i32
  }
  func.func @transform_4(%arg0: i32) -> (i32, i32) {
    %c0_i32 = arith.constant 0 : i32
    %c0_i32_0 = arith.constant 0 : i32
    return %c0_i32, %arg0 : i32, i32
  }
}

</mosaic_0001>

<bundles_post_ra>
// kernel: tpu_custom_call.1
= control target key start
LH: loop header
LB: loop body
LE: loop exit
PB: predicated region body
PF: predicated region fallthrough
CT: control target
= control target key end

     0   :  { %s6096_s0 = inlined_call_operand.hbm [shape: f32[8,1024], index: 0, kind: input, shape index: {}]   ;;  %s6097_s1 = inlined_call_operand.hbm [shape: f32[8,8], index: 1, kind: input, shape index: {}]   ;;  %s6098_s2 = inlined_call_operand.hbm [shape: f32[1024,256], index: 2, kind: input, shape index: {}]   ;;  %s6099_s3 = inlined_call_operand.hbm [shape: f32[8,256], index: 3, kind: input, shape index: {}]   ;;  %s6100_s4 = inlined_call_operand.hbm [shape: f32[8,256], index: 4, kind: output, shape index: {}]  }
   0x1   :  { %6187 = sst [smem:[#allocation18_spill]] %s6096_s0 }
   0x2   :  { %6188 = sst [smem:[#allocation19_spill]] %s6098_s2 }
   0x3   :  { %9 = vsyncpa [#allocation3], 0 }
   0x4   :  { %10 = vsyncpa [#allocation6], 0 }
   0x5   :  { %11 = vsyncpa [#allocation4], 0 }
   0x6   :  { %13 = vsyncpa [#allocation4 + $0x1], 0  ;;  %s3742_s15 = smov 0   ;;  %s3744_s16 = smov 0  }
   0x7   :  { %s3746_s17 = smov 0   ;;  %s3748_s18 = smov 0  }
   0x8 LB: > { %s3763_s19 = sadd.s32 4294967295, %s3710_s18   ;;  %s3422_s20 = sadd.s32 4294967294, %s3710_s18   ;;  %s3710_s18 = sphi %s3748_s18, %s6328_s18   ;;  %s3706_s17 = sphi %s3746_s17, %s6332_s17   ;;  %s3702_s16 = sphi %s3744_s16, %s6331_s16   ;;  %s3698_s15 = sphi %s3742_s15, %s6330_s15  }
   0x9   : > { %s3767_s21 = sadd.s32 1, %s3710_s18   ;;  %s68_s22 = sadd.s32 1, %s3706_s17 }
   0xa   : > { %6189 = sst [smem:[#allocation14_spill]] %s3767_s21  ;;  %s65_s23 = ssub.s32 %s3710_s18, %s3767_s21 }
   0xb   : > { %p75_p0 = scmp.ne.s32.totalorder %s3706_s17, %s3702_s16  ;;  %p66_p1 = scmp.eq.s32.totalorder %s65_s23, 0 }
   0xc   : > { %p76_p2 = scmp.eq.s32.totalorder %s3710_s18, 0  ;;  %p81_p3 = scmp.ne.s32.totalorder %s3702_s16, %s3698_s15 }
   0xd   : > { %p6102_p4 = scmp.eq.s32.totalorder %s3763_s19, 0  ;;  %p131_p7 = scmp.eq.s32.totalorder %s3763_s19, 1 }
   0xe   : > { %s3779_s24 = scalar_select %p66_p1, %s3706_s17, %s68_s22  }
   0xf   : > { %p3781_p5 = por %p76_p2, %p75_p0  ;;  %p3787_p6 = por %p6102_p4, %p81_p3 }
  0x10   : > { %6190 = sst [smem:[#allocation15_spill]] %s3779_s24  ;;  %p137_p8 = scmp.eq.s32.totalorder %s3422_s20, 1 }
  0x11   : > { %p3423_p9 = scmp.ge.s32.totalorder %s3710_s18, 1  ;;  %p144_p10 = scmp.lt.s32.totalorder %s3710_s18, 3 }
  0x12   : > { %p3794_p11 = por %p131_p7, %p75_p0  ;;  %p3798_p12 = por %p137_p8, %p81_p3 }
  0x13   : > { %p3802_p13 = pnand %p3423_p9, %p144_p10  ;;  %s6197_s0 = sld [smem:[#allocation18_spill]] }
  0x14   : > { %s6194_s28 = scalar_select %p3798_p12, 1, 0 }
  0x15   : > { %p3455_p0 = pneg %p3802_p13  ;;  %s3712_s7 = smov [#allocation2]  }
  0x16   : > { %6195 = sst [smem:[#allocation16_spill]] %s6194_s28  ;;  %s158_s8 = sshll.u32 %s3712_s7, 4  ;;  %s159_s8 = int_to_ptr.vmem [resolvable:$true] %s158_s8 }
  0x17   : > { %p3814_p2 = pnand %p3455_p0, %p6102_p4  ;;  %p3475_p3 = scmp.lt.s32.totalorder %s3710_s18, 2 }
  0x18   : > { %s181_s10 = sand.u32 1, %s3710_s18   ;;  %s6101_s12 = sand.u32 1, %s3706_s17  }
  0x19   : > { %s156_s6 = sshll.u32 %s6197_s0, 4  ;;  %p3824_p7 = pnand %p3475_p3, %p3781_p5  ;;  %s157_s6 = int_to_ptr.hbm [resolvable:$true] %s156_s6 }
  0x1a   : > { %3458 = dma.hbm_to_vmem [thread:$0]  (!%p3814_p2), %s157_s6, 1024, %s159_s8, [#allocation3]  }
  0x1b   : > { %s3427_s13 = sshll.u32 %s6101_s12, 10  ;;  %s6103_s14 = sshll.u32 %s3710_s18, 3 }
  0x1c   : > { %s6200_s2 = sld [smem:[#allocation19_spill]]  ;;  %s185_s30 = scalar_lea.vmem [#allocation7], %s3427_s13 }
  0x1d   : > { %s192_s5 = sshll.u32 %s185_s30, 4  ;;  %s3837_s25 = scalar_lea.sflag [#allocation3], %s181_s10  ;;  %s193_s5 = int_to_ptr.vmem [resolvable:$true] %s192_s5 }
  0x1e   : > { %p3550_p8 = pneg %p3824_p7 }
  0x22   : > { %s189_s23 = scalar_lea.hbm %s6200_s2, %s6103_s14  ;;  %s3553_s13 = scalar_lea.hbm %s6200_s2, 2048 }
  0x23   : > { %s190_s7 = sshll.u32 %s189_s23, 4  ;;  %s191_s7 = int_to_ptr.hbm [resolvable:$true] %s190_s7 }
  0x24   : > { %s3546_s6 = sshra.s32 %s191_s7, 4  ;;  %s3547_s6 = int_to_ptr.hbm [resolvable:$true] %s3546_s6 }
  0x25   : > { %s3548_s8 = scalar_lea.hbm %s3547_s6, 1024  ;;  %p3554_p0 = scmp.lt.s32.totalorder %s3547_s6, %s6200_s2 }
  0x26   : > { %p3549_p5 = scmp.ne.s32.totalorder %s3547_s6, %s3548_s8  ;;  %p3555_p3 = scmp.lt.s32.totalorder %s3553_s13, %s3548_s8 }
  0x28   : > { %p3551_p9 = pnand %p3550_p8, %p3549_p5  ;;  %p3556_p1 = por %p3555_p3, %p3554_p0 }
  0x2a   : > { %p3552_p10 = pneg %p3551_p9 }
  0x2c   : > { %p3557_p4 = pnand %p3556_p1, %p3552_p10 }
  0x2e   : > { %3560 = shalt.err (!%p3557_p4)
}
  0x2f   : > { %s3713_s10 = smov 256   ;;  %s3714_s30 = smov 128  }
  0x30   : > { %s3715_s14 = smov 8   ;;  %s168_s0 = sshll.u32 %s6097_s1, 4  ;;  %s169_s0 = int_to_ptr.hbm [resolvable:$true] %s168_s0 }
  0x31   : > { %3465 = dma.hbm_to_vmem [thread:$0]  (!%p3824_p7), %s191_s7, 16384, %s193_s5, %s3837_s25, %s3713_s10, %s3714_s30, %s3715_s14  }
  0x32   : > { %s3716_s6 = smov [#allocation5]   ;;  %s6201_s13 = sand.u32 1, %s3706_s17  }
  0x33   : > { %s170_s8 = sshll.u32 %s3716_s6, 4  ;;  %s3429_s22 = sshll.u32 %s6201_s13, 3  ;;  %s171_s8 = int_to_ptr.vmem [resolvable:$true] %s170_s8 }
  0x34   : > { %3461 = dma.hbm_to_vmem [thread:$0]  (!%p3814_p2), %s169_s0, 128, %s171_s8, [#allocation6]  }
  0x35   : > { %s6202_s23 = sshll.u32 %s3710_s18, 3  ;;  %s206_s14 = scalar_lea.vmem [#allocation8], %s3429_s22 }
  0x36   : > { %s210_s21 = scalar_lea.hbm %s6099_s3, %s6202_s23  ;;  %s214_s5 = sshll.u32 %s206_s14, 4  ;;  %s215_s5 = int_to_ptr.vmem [resolvable:$true] %s214_s5 }
  0x37   : > { %s212_s28 = sshll.u32 %s210_s21, 4  ;;  %s3613_s30 = scalar_lea.hbm %s6099_s3, 16  ;;  %s213_s28 = int_to_ptr.hbm [resolvable:$true] %s212_s28 }
  0x38   : > { %s3606_s7 = sshra.s32 %s213_s28, 4  ;;  %s3607_s7 = int_to_ptr.hbm [resolvable:$true] %s3606_s7 }
  0x39   : > { %s3608_s10 = scalar_lea.hbm %s3607_s7, 8  ;;  %p3614_p2 = scmp.lt.s32.totalorder %s3607_s7, %s6099_s3 }
  0x3a   : > { %p3609_p4 = scmp.ne.s32.totalorder %s3607_s7, %s3608_s10  ;;  %p3615_p9 = scmp.lt.s32.totalorder %s3613_s30, %s3608_s10 }
  0x3c   : > { %p3611_p1 = pnand %p3609_p4, %p3550_p8  ;;  %p3616_p10 = por %p3615_p9, %p3614_p2 }
  0x3e   : > { %p3612_p5 = pneg %p3611_p1 }
  0x40   : > { %p3617_p0 = pnand %p3616_p10, %p3612_p5 }
  0x42   : > { %3620 = shalt.err (!%p3617_p0)
}
  0x43   : > { %3468 = dma.hbm_to_vmem [thread:$0]  (!%p3824_p7), %s213_s28, 128, %s215_s5, %s3837_s25  }
  0x44   : > { %223 = sbr.rel (%p3802_p13) target bundleno = 781 (0x30d), region = 36 }
  0x49   : > { %p6203_p8 = scmp.eq.s32.totalorder %s3763_s19, 0 }
  0x4b   : > { %3681 = dma.done.wait (%p6203_p8), [#allocation3], 1024   ;;  %p6204_p3 = pmov %p6203_p8 }
  0x4d   : > { %3683 = vsyncadd (%p6204_p3), [#allocation3], 4294966272  ;;  %p6205_p4 = pmov %p6204_p3 }
  0x4e   : > { %p6206_p1 = pmov %p6204_p3 }
  0x4f   : > { %3685 = dma.done.wait (%p6205_p4), [#allocation6], 128  }
  0x50   : > { %3687 = vsyncadd (%p6206_p1), [#allocation6], 4294967168  ;;  %s235_s21 = sand.u32 1, %s3763_s19   ;;  %s3889_s24 = sand.u32 1, %s3702_s16  }
  0x51   : > { %s3434_s28 = sshll.u32 %s3889_s24, 10  ;;  %s236_s29 = scalar_lea.sflag [#allocation3], %s235_s21 }
  0x52   : > { %s3892_s11 = scalar_lea.vmem [#allocation7], %s3434_s28 }
  0x53   : > { %3689 = dma.done.wait (%p3787_p6), %s236_s29, 16512  }
  0x54   : > { %3691 = vsyncadd (%p3787_p6), %s236_s29, 4294950784  ;;  %v303_v0 = vld [vmem:[%s3892_s11 + $0x78] sm:$0xff]  ;;  %v302_v1 = vld [vmem:[%s3892_s11 + $0x70] sm:$0xff]  ;;  %vm3146_vm0 = vcmask 64512   ;;  %s3435_s26 = sshll.u32 %s3889_s24, 3  ;;  %s3438_s20 = sshll.u32 %s3763_s19, 3 }
  0x55   : > { %v301_v2 = vld [vmem:[%s3892_s11 + $0x68] sm:$0xff]  ;;  %v3901_v3 = vand.u32 4294901760, %v303_v0  ;;  %v3903_v4 = vand.u32 4294901760, %v302_v1  ;;  %v300_v6 = vld [vmem:[%s3892_s11 + $0x60] sm:$0xff]  ;;  %v299_v7 = vld [vmem:[%s3892_s11 + $0x58] sm:$0xff]  ;;  %s249_s25 = scalar_lea.vmem [#allocation8], %s3435_s26  ;;  %s3308_s13 = scalar_lea.hbm %s6100_s4, %s3438_s20 }
  0x56   : > { %v3905_v5 = vand.u32 4294901760, %v301_v2  ;;  %v298_v8 = vld [vmem:[%s3892_s11 + $0x50] sm:$0xff]  ;;  %v3910_v9 = vand.u32 4294901760, %v300_v6  ;;  %v3912_v10 = vand.u32 4294901760, %v299_v7  ;;  %v297_v12 = vld [vmem:[%s3892_s11 + $0x48] sm:$0xff]  ;;  %v296_v13 = vld [vmem:[%s3892_s11 + $0x40] sm:$0xff] }
  0x57   : > { %v3914_v11 = vand.u32 4294901760, %v298_v8  ;;  %417 = vmatpush.msra.mxu0 %v3901_v3  ;;  %v3920_v14 = vsub.f32 %v303_v0, %v3901_v3  ;;  %v3923_v15 = vsub.f32 %v302_v1, %v3903_v4  ;;  %613 = vmatpush.msra.mxu3 %v3901_v3  ;;  %v3929_v17 = vand.u32 4294901760, %v297_v12  ;;  %v295_v18 = vld [vmem:[%s3892_s11 + $0x38] sm:$0xff]  ;;  %v294_v26 = vld [vmem:[%s3892_s11 + $0x30] sm:$0xff]  ;;  %v293_v34 = vld [vmem:[%s3892_s11 + $0x28] sm:$0xff]  ;;  %s279_s22 = scalar_lea.vmem [#allocation9], %s3435_s26 }
  0x58   : > { %v3927_v16 = vsub.f32 %v301_v2, %v3905_v5  ;;  %v3933_v19 = vsub.f32 %v300_v6, %v3910_v9  ;;  %v3936_v20 = vsub.f32 %v299_v7, %v3912_v10  ;;  %v3946_v25 = vand.u32 4294901760, %v296_v13  ;;  %v292_v42 = vld [vmem:[%s3892_s11 + $0x20] sm:$0xff]  ;;  %v291_v48 = vld [vmem:[%s3892_s11 + $0x18] sm:$0xff]  ;;  %v290_v54 = vld [vmem:[%s3892_s11 + $0x10] sm:$0xff]  ;;  %s3310_s23 = sshll.u32 %s279_s22, 4  ;;  %s3312_s14 = sshll.u32 %s3308_s13, 4  ;;  %s3311_s23 = int_to_ptr.vmem [resolvable:$true] %s3310_s23  ;;  %s3313_s14 = int_to_ptr.hbm [resolvable:$true] %s3312_s14 }
  0x59   : > { %v3939_v21 = vsub.f32 %v298_v8, %v3914_v11  ;;  %419 = vmatpush.msra.mxu0 %v3903_v4  ;;  %560 = vmatpush.msra.mxu2 %v3920_v14  ;;  %v459_v22 = vand.u32 4294901760, %v3920_v14  ;;  %v6122_v23 = vand.u32 4294901760, %v3923_v15  ;;  %v3951_v28 = vand.u32 4294901760, %v295_v18  ;;  %v319_v59 = vld [vmem:[%s3892_s11 + $0xf8] sm:$0xff]  ;;  %v289_v61 = vld [vmem:[%s3892_s11 + $0x8] sm:$0xff]  ;;  %v288_v2 = vld [vmem:[%s3892_s11] sm:$0xff] }
  0x5a   : > { %v6120_v24 = vand.u32 4294901760, %v3927_v16  ;;  %615 = vmatpush.msra.mxu3 %v3903_v4  ;;  %v6119_v27 = vand.u32 4294901760, %v3933_v19  ;;  %v3954_v29 = vsub.f32 %v297_v12, %v3929_v17  ;;  %v6116_v33 = vand.u32 4294901760, %v3936_v20  ;;  %v318_v6 = vld [vmem:[%s3892_s11 + $0xf0] sm:$0xff]  ;;  %s3298_s19 = scalar_lea.sflag [#allocation4], %s3889_s24  ;;  %s3650_s5 = sshra.s32 %s3313_s14, 4  ;;  %s3651_s5 = int_to_ptr.hbm [resolvable:$true] %s3650_s5 }
  0x5b   : > { %421 = vmatpush.msra.mxu0 %v3905_v5  ;;  %563 = vmatpush.msra.mxu2 %v3923_v15  ;;  %v460_v30 = vsub.f32 %v3920_v14, %v459_v22  ;;  %v466_v31 = vsub.f32 %v3923_v15, %v6122_v23  ;;  %v3970_v35 = vand.u32 4294901760, %v294_v26  ;;  %v6115_v36 = vand.u32 4294901760, %v3939_v21  ;;  %s3652_s7 = scalar_lea.hbm %s3651_s5, 8  ;;  %s3656_s0 = scalar_lea.hbm %s6100_s4, 16 }
  0x5c   : > { %v472_v32 = vsub.f32 %v3927_v16, %v6120_v24  ;;  %617 = vmatpush.msra.mxu3 %v3905_v5  ;;  %v478_v39 = vsub.f32 %v3933_v19, %v6119_v27  ;;  %v3979_v40 = vsub.f32 %v296_v13, %v3946_v25  ;;  %v3982_v41 = vand.u32 4294901760, %v293_v34  ;;  %p3653_p6 = scmp.ne.s32.totalorder %s3651_s5, %s3652_s7  ;;  %p3657_p5 = scmp.lt.s32.totalorder %s3651_s5, %s6100_s4 }
  0x5d   : > { %423 = vmatpush.msra.mxu0 %v3910_v9  ;;  %v461_v37 = vand.u32 4294901760, %v460_v30  ;;  %566 = vmatpush.msra.mxu2 %v3927_v16  ;;  %v467_v38 = vand.u32 4294901760, %v466_v31  ;;  %v484_v44 = vsub.f32 %v3936_v20, %v6116_v33  ;;  %v6113_v45 = vand.u32 4294901760, %v3954_v29  ;;  %p3658_p2 = scmp.lt.s32.totalorder %s3656_s0, %s3652_s7 }
  0x5e   : > { %619 = vmatpush.msra.mxu3 %v3910_v9  ;;  %v473_v43 = vand.u32 4294901760, %v472_v32  ;;  %v3991_v46 = vsub.f32 %v295_v18, %v3951_v28  ;;  %v490_v47 = vsub.f32 %v3939_v21, %v6115_v36  ;;  %v479_v49 = vand.u32 4294901760, %v478_v39  ;;  %v317_v32 = vld [vmem:[%s3892_s11 + $0xe8] sm:$0xff]  ;;  %p3654_p13 = pnand %p3653_p6, %p3794_p11 }
  0x5f   : > { %425 = vmatpush.msra.mxu0 %v3912_v10  ;;  %462 = vmatpush.msra.mxu1 %v461_v37  ;;  %v4000_v50 = vand.u32 4294901760, %v292_v42  ;;  %v6112_v51 = vand.u32 4294901760, %v3979_v40  ;;  %v4004_v52 = vsub.f32 %v294_v26, %v3970_v35  ;;  %v4009_v53 = vsub.f32 %v293_v34, %v3982_v41  ;;  %p3659_p9 = por %p3658_p2, %p3657_p5 }
  0x60   : > { %569 = vmatpush.msra.mxu2 %v3933_v19  ;;  %621 = vmatpush.msra.mxu3 %v3912_v10  ;;  %v485_v55 = vand.u32 4294901760, %v484_v44  ;;  %v496_v56 = vsub.f32 %v3954_v29, %v6113_v45  ;;  %v4016_v57 = vand.u32 4294901760, %v291_v48  ;;  %v6111_v58 = vand.u32 4294901760, %v3991_v46  ;;  %v316_v44 = vld [vmem:[%s3892_s11 + $0xe0] sm:$0xff]  ;;  %p3655_p7 = pneg %p3654_p13 }
  0x61   : > { %427 = vmatpush.msra.mxu0 %v3914_v11  ;;  %468 = vmatpush.msra.mxu1 %v467_v38  ;;  %v491_v60 = vand.u32 4294901760, %v490_v47  ;;  %v502_v62 = vsub.f32 %v3979_v40, %v6112_v51  ;;  %v4027_v63 = vand.u32 4294901760, %v290_v54  ;;  %v6109_v0 = vand.u32 4294901760, %v4004_v52  ;;  %v312_v45 = vld [vmem:[%s3892_s11 + $0xc0] sm:$0xff] }
  0x62   : > { %572 = vmatpush.msra.mxu2 %v3936_v20  ;;  %623 = vmatpush.msra.mxu3 %v3914_v11  ;;  %v4031_v1 = vsub.f32 %v292_v42, %v4000_v50  ;;  %v6108_v7 = vand.u32 4294901760, %v4009_v53  ;;  %v4038_v8 = vand.u32 4294901760, %v319_v59  ;;  %v497_v12 = vand.u32 4294901760, %v496_v56  ;;  %p3660_p10 = pnand %p3659_p9, %p3655_p7 }
  0x63   : > { %429 = vmatpush.msra.mxu0 %v3929_v17  ;;  %474 = vmatpush.msra.mxu1 %v473_v43  ;;  %v508_v13 = vsub.f32 %v3991_v46, %v6111_v58  ;;  %v4044_v18 = vand.u32 4294901760, %v289_v61  ;;  %v4047_v26 = vsub.f32 %v291_v48, %v4016_v57  ;;  %v4051_v30 = vand.u32 4294901760, %v288_v2 }
  0x64   : > { %575 = vmatpush.msra.mxu2 %v3939_v21  ;;  %625 = vmatpush.msra.mxu3 %v3929_v17  ;;  %v4053_v31 = vand.u32 4294901760, %v318_v6  ;;  %v503_v34 = vand.u32 4294901760, %v502_v62  ;;  %v514_v37 = vsub.f32 %v4004_v52, %v6109_v0  ;;  %v6107_v38 = vand.u32 4294901760, %v4031_v1 }
  0x65   : > { %431 = vmatpush.msra.mxu0 %v3946_v25  ;;  %480 = vmatpush.msra.mxu1 %v479_v49  ;;  %6207 = vst [vmem:[#allocation17_spill] sm:$0xff] %v4051_v30  ;;  %v4062_v39 = vsub.f32 %v290_v54, %v4027_v63  ;;  %v520_v42 = vsub.f32 %v4009_v53, %v6108_v7  ;;  %v509_v47 = vand.u32 4294901760, %v508_v13  ;;  %v6110_v48 = vand.u32 4294901760, %v4047_v26  ;;  %v314_v13 = vld [vmem:[%s3892_s11 + $0xd0] sm:$0xff] }
  0x66   : > { %578 = vmatpush.msra.mxu2 %v3954_v29  ;;  %627 = vmatpush.msra.mxu3 %v3946_v25  ;;  %v4070_v43 = vsub.f32 %v319_v59, %v4038_v8  ;;  %v4076_v49 = vsub.f32 %v289_v61, %v4044_v18  ;;  %v4078_v54 = vand.u32 4294901760, %v317_v32  ;;  %v4086_v56 = vsub.f32 %v318_v6, %v4053_v31  ;;  %v315_v59 = vld [vmem:[%s3892_s11 + $0xd8] sm:$0xff] }
  0x67   : > { %433 = vmatpush.msra.mxu0 %v3951_v28  ;;  %486 = vmatpush.msra.mxu1 %v485_v55  ;;  %v4083_v55 = vsub.f32 %v288_v2, %v4051_v30  ;;  %v526_v61 = vsub.f32 %v4031_v1, %v6107_v38  ;;  %v6114_v62 = vand.u32 4294901760, %v4062_v39  ;;  %v521_v2 = vand.u32 4294901760, %v520_v42  ;;  %v313_v42 = vld [vmem:[%s3892_s11 + $0xc8] sm:$0xff] }
  0x68   : > { %581 = vmatpush.msra.mxu2 %v3979_v40  ;;  %629 = vmatpush.msra.mxu3 %v3951_v28  ;;  %v6117_v6 = vand.u32 4294901760, %v4070_v43  ;;  %v4106_v38 = vsub.f32 %v317_v32, %v4078_v54  ;;  %v4108_v7 = vand.u32 4294901760, %v315_v59  ;;  %v4122_v51 = vand.u32 4294901760, %v314_v13 }
  0x69   : > { %435 = vmatpush.msra.mxu0 %v3970_v35  ;;  %492 = vmatpush.msra.mxu1 %v491_v60  ;;  %v515_v60 = vand.u32 4294901760, %v514_v37  ;;  %v6118_v37 = vand.u32 4294901760, %v4076_v49  ;;  %v6123_v0 = vand.u32 4294901760, %v4083_v55  ;;  %v538_v32 = vsub.f32 %v4062_v39, %v6114_v62 }
  0x6a   : > { %584 = vmatpush.msra.mxu2 %v3991_v46  ;;  %631 = vmatpush.msra.mxu3 %v3970_v35  ;;  %v6124_v36 = vand.u32 4294901760, %v4106_v38  ;;  %v4138_v33 = vsub.f32 %v315_v59, %v4108_v7  ;;  %v4154_v24 = vsub.f32 %v314_v13, %v4122_v51 }
  0x6b   : > { %437 = vmatpush.msra.mxu0 %v3982_v41  ;;  %498 = vmatpush.msra.mxu1 %v497_v12  ;;  %v4094_v12 = vand.u32 4294901760, %v316_v44  ;;  %v550_v59 = vsub.f32 %v4083_v55, %v6123_v0 }
  0x6c   : > { %587 = vmatpush.msra.mxu2 %v4004_v52  ;;  %633 = vmatpush.msra.mxu3 %v3982_v41  ;;  %v813_v13 = vsub.f32 %v4106_v38, %v6124_v36 }
  0x6d   : > { %439 = vmatpush.msra.mxu0 %v4000_v50  ;;  %504 = vmatpush.msra.mxu1 %v503_v34  ;;  %v532_v34 = vsub.f32 %v4047_v26, %v6110_v48  ;;  %v527_v48 = vand.u32 4294901760, %v526_v61  ;;  %v4120_v58 = vsub.f32 %v316_v44, %v4094_v12  ;;  %v4130_v61 = vand.u32 4294901760, %v313_v42 }
  0x6e   : > { %590 = vmatpush.msra.mxu2 %v4009_v53  ;;  %635 = vmatpush.msra.mxu3 %v4000_v50  ;;  %v544_v44 = vsub.f32 %v4076_v49, %v6118_v37  ;;  %v539_v37 = vand.u32 4294901760, %v538_v32 }
  0x6f   : > { %441 = vmatpush.msra.mxu0 %v4016_v57  ;;  %510 = vmatpush.msra.mxu1 %v509_v47  ;;  %v6121_v47 = vand.u32 4294901760, %v4086_v56  ;;  %v533_v62 = vand.u32 4294901760, %v532_v34  ;;  %v311_v34 = vld [vmem:[%s3892_s11 + $0xb8] sm:$0xff]  ;;  %v6125_v27 = vand.u32 4294901760, %v4120_v58  ;;  %v4160_v23 = vsub.f32 %v313_v42, %v4130_v61 }
  0x70   : > { %593 = vmatpush.msra.mxu2 %v4031_v1  ;;  %637 = vmatpush.msra.mxu3 %v4016_v57  ;;  %v545_v32 = vand.u32 4294901760, %v544_v44  ;;  %v4168_v14 = vand.u32 4294901760, %v311_v34  ;;  %v551_v44 = vand.u32 4294901760, %v550_v59  ;;  %v6210_v59 = vand.u32 4294901760, %v4138_v33 }
  0x71   : > { %443 = vmatpush.msra.mxu0 %v4027_v63  ;;  %516 = vmatpush.msra.mxu1 %v515_v60  ;;  %v801_v60 = vsub.f32 %v4070_v43, %v6117_v6  ;;  %v807_v6 = vsub.f32 %v4086_v56, %v6121_v47  ;;  %v819_v36 = vsub.f32 %v4120_v58, %v6125_v27 }
  0x72   : > { %596 = vmatpush.msra.mxu2 %v4047_v26  ;;  %639 = vmatpush.msra.mxu3 %v4027_v63  ;;  %v825_v27 = vsub.f32 %v4138_v33, %v6210_v59 }
  0x73   : > { %445 = vmatpush.msra.mxu0 %v4044_v18  ;;  %522 = vmatpush.msra.mxu1 %v521_v2  ;;  %v4145_v2 = vand.u32 4294901760, %v312_v45  ;;  %v802_v47 = vand.u32 4294901760, %v801_v60  ;;  %v808_v42 = vand.u32 4294901760, %v807_v6  ;;  %v309_v60 = vld [vmem:[%s3892_s11 + $0xa8] sm:$0xff]  ;;  %v308_v6 = vld [vmem:[%s3892_s11 + $0xa0] sm:$0xff] }
  0x74   : > { %599 = vmatpush.msra.mxu2 %v4062_v39  ;;  %641 = vmatpush.msra.mxu3 %v4044_v18  ;;  %v4195_v0 = vand.u32 4294901760, %v309_v60 }
  0x75   : > { %447 = vmatpush.msra.mxu0 %v4051_v30  ;;  %528 = vmatpush.msra.mxu1 %v527_v48  ;;  %v310_v48 = vld [vmem:[%s3892_s11 + $0xb0] sm:$0xff] }
  0x76   : > { %602 = vmatpush.msra.mxu2 %v4076_v49  ;;  %643 = vmatpush.msra.mxu3 %v4051_v30  ;;  %v4193_v30 = vsub.f32 %v311_v34, %v4168_v14 }
  0x77   : > { %654 = vmatpush.msrb.mxu0 %v459_v22  ;;  %534 = vmatpush.msra.mxu1 %v533_v62  ;;  %v6208_v22 = vand.u32 4294901760, %v3923_v15  ;;  %v4174_v62 = vsub.f32 %v312_v45, %v4145_v2  ;;  %v4182_v15 = vand.u32 4294901760, %v310_v48  ;;  %v4208_v45 = vand.u32 4294901760, %v308_v6 }
  0x78   : > { %605 = vmatpush.msra.mxu2 %v4083_v55  ;;  %803 = vmatpush.msrb.mxu3 %v802_v47 }
  0x79   : > { %658 = vmatpush.msrb.mxu0 %v6208_v22  ;;  %540 = vmatpush.msra.mxu1 %v539_v37  ;;  %v6209_v22 = vand.u32 4294901760, %v3927_v16  ;;  %v814_v37 = vand.u32 4294901760, %v813_v13  ;;  %v6211_v16 = vand.u32 4294901760, %v3933_v19  ;;  %v6212_v13 = vand.u32 4294901760, %v4154_v24 }
  0x7a   : > { %758 = vmatpush.msrb.mxu2 %v4038_v8  ;;  %809 = vmatpush.msrb.mxu3 %v808_v42  ;;  %v4206_v34 = vsub.f32 %v310_v48, %v4182_v15  ;;  %v6213_v19 = vand.u32 4294901760, %v3936_v20  ;;  %v6214_v42 = vand.u32 4294901760, %v4160_v23  ;;  %v4219_v48 = vsub.f32 %v309_v60, %v4195_v0 }
  0x7b   : > { %662 = vmatpush.msrb.mxu0 %v6209_v22  ;;  %546 = vmatpush.msra.mxu1 %v545_v32  ;;  %v307_v22 = vld [vmem:[%s3892_s11 + $0x98] sm:$0xff]  ;;  %v820_v32 = vand.u32 4294901760, %v819_v36  ;;  %v831_v59 = vsub.f32 %v4154_v24, %v6212_v13  ;;  %v6215_v20 = vand.u32 4294901760, %v3939_v21  ;;  %v4233_v60 = vsub.f32 %v308_v6, %v4208_v45  ;;  %v304_v6 = vld [vmem:[%s3892_s11 + $0x80] sm:$0xff] }
  0x7c   : > { %760 = vmatpush.msrb.mxu2 %v4053_v31  ;;  %v280_v36 = vld [vmem:[#allocation2] sm:$0xff]  ;;  %815 = vmatpush.msrb.mxu3 %v814_v37  ;;  %v4221_v47 = vand.u32 4294901760, %v307_v22  ;;  %v6217_v21 = vand.u32 4294901760, %v3954_v29  ;;  %v6219_v29 = vand.u32 4294901760, %v3979_v40  ;;  %v6221_v40 = vand.u32 4294901760, %v3991_v46 }
  0x7d   : > { %666 = vmatpush.msrb.mxu0 %v6211_v16  ;;  %552 = vmatpush.msra.mxu1 %v551_v44  ;;  %v837_v44 = vsub.f32 %v4160_v23, %v6214_v42  ;;  %v826_v16 = vand.u32 4294901760, %v825_v27  ;;  %v306_v42 = vld [vmem:[%s3892_s11 + $0x90] sm:$0xff]  ;;  %v832_v27 = vand.u32 4294901760, %v831_v59  ;;  %v4235_v13 = vand.u32 4294901760, %v280_v36 }
  0x7e   : > { %762 = vmatpush.msrb.mxu2 %v4078_v54  ;;  %821 = vmatpush.msrb.mxu3 %v820_v32  ;;  %v6218_v32 = vand.u32 4294901760, %v4193_v30  ;;  %v4249_v37 = vsub.f32 %v307_v22, %v4221_v47  ;;  %v4279_v46 = vand.u32 4294901760, %v304_v6 }
  0x7f   : > { %670 = vmatpush.msrb.mxu0 %v6213_v19  ;;  %721 = vmatpush.msrb.mxu1 %v3901_v3  ;;  %v6216_v3 = vand.u32 4294901760, %v4174_v62 }
  0x80   : > { %764 = vmatpush.msrb.mxu2 %v4094_v12  ;;  %827 = vmatpush.msrb.mxu3 %v826_v16  ;;  %v849_v59 = vsub.f32 %v4193_v30, %v6218_v32  ;;  %v4260_v32 = vsub.f32 %v280_v36, %v4235_v13 }
  0x81   : > { %674 = vmatpush.msrb.mxu0 %v6215_v20  ;;  %723 = vmatpush.msrb.mxu1 %v3903_v4  ;;  %v843_v19 = vsub.f32 %v4174_v62, %v6216_v3  ;;  %v838_v4 = vand.u32 4294901760, %v837_v44  ;;  %v305_v20 = vld [vmem:[%s3892_s11 + $0x88] sm:$0xff]  ;;  %v4246_v3 = vand.u32 4294901760, %v306_v42  ;;  %v6220_v44 = vand.u32 4294901760, %v4206_v34 }
  0x82   : > { %766 = vmatpush.msrb.mxu2 %v4108_v7  ;;  %833 = vmatpush.msrb.mxu3 %v832_v27  ;;  %v4262_v22 = vand.u32 4294901760, %v305_v20 }
  0x83   : > { %678 = vmatpush.msrb.mxu0 %v6217_v21  ;;  %725 = vmatpush.msrb.mxu1 %v3905_v5  ;;  %v844_v5 = vand.u32 4294901760, %v843_v19  ;;  %v855_v16 = vsub.f32 %v4206_v34, %v6220_v44  ;;  %v866_v21 = vand.u32 4294901760, %v4233_v60  ;;  %v6222_v19 = vand.u32 4294901760, %v4219_v48 }
  0x84   : > { %768 = vmatpush.msrb.mxu2 %v4122_v51  ;;  %839 = vmatpush.msrb.mxu3 %v838_v4  ;;  %v4274_v36 = vsub.f32 %v306_v42, %v4246_v3  ;;  %v6223_v44 = vand.u32 4294901760, %v4004_v52  ;;  %v4287_v42 = vsub.f32 %v305_v20, %v4262_v22  ;;  %v6224_v52 = vand.u32 4294901760, %v4009_v53 }
  0x85   : > { %682 = vmatpush.msrb.mxu0 %v6219_v29  ;;  %727 = vmatpush.msrb.mxu1 %v3910_v9  ;;  %v850_v9 = vand.u32 4294901760, %v849_v59  ;;  %v861_v27 = vsub.f32 %v4219_v48, %v6222_v19  ;;  %v872_v29 = vand.u32 4294901760, %v4249_v37  ;;  %v867_v4 = vsub.f32 %v4233_v60, %v866_v21 }
  0x86   : > { %770 = vmatpush.msrb.mxu2 %v4130_v61  ;;  %845 = vmatpush.msrb.mxu3 %v844_v5  ;;  %v450_v59 = vand.u32 4294901760, %v4260_v32  ;;  %v6225_v19 = vand.u32 4294901760, %v4031_v1  ;;  %v4301_v53 = vsub.f32 %v304_v6, %v4279_v46  ;;  %v6227_v6 = vand.u32 4294901760, %v4062_v39 }
  0x87   : > { %686 = vmatpush.msrb.mxu0 %v6221_v40  ;;  %729 = vmatpush.msrb.mxu1 %v3912_v10  ;;  %v856_v10 = vand.u32 4294901760, %v855_v16  ;;  %v862_v5 = vand.u32 4294901760, %v861_v27  ;;  %v873_v16 = vsub.f32 %v4249_v37, %v872_v29  ;;  %v878_v40 = vand.u32 4294901760, %v4274_v36 }
  0x88   : > { %772 = vmatpush.msrb.mxu2 %v4145_v2  ;;  %851 = vmatpush.msrb.mxu3 %v850_v9  ;;  %v451_v20 = vsub.f32 %v4260_v32, %v450_v59  ;;  %v884_v9 = vand.u32 4294901760, %v4287_v42  ;;  %v6229_v39 = vand.u32 4294901760, %v4083_v55 }
  0x89   : > { %690 = vmatpush.msrb.mxu0 %v6223_v44  ;;  %731 = vmatpush.msrb.mxu1 %v3914_v11  ;;  %v281_v11 = vld [vmem:[#allocation2 + $0x8] sm:$0xff]  ;;  %v6226_v44 = vand.u32 4294901760, %v4047_v26  ;;  %v879_v1 = vsub.f32 %v4274_v36, %v878_v40 }
  0x8a   : > { %774 = vmatpush.msrb.mxu2 %v4168_v14  ;;  %857 = vmatpush.msrb.mxu3 %v856_v10  ;;  %v4306_v27 = vand.u32 4294901760, %v281_v11  ;;  %v890_v10 = vand.u32 4294901760, %v4301_v53  ;;  %v452_v26 = vand.u32 4294901760, %v451_v20  ;;  %v326_v20 = vld [vmem:[%s3892_s11 + $0x130] sm:$0xff] }
  0x8b   : > { %694 = vmatpush.msrb.mxu0 %v6224_v52  ;;  %733 = vmatpush.msrb.mxu1 %v3929_v17  ;;  %v868_v17 = vand.u32 4294901760, %v867_v4  ;;  %v6228_v52 = vand.u32 4294901760, %v4076_v49 }
  0x8c   : > { %776 = vmatpush.msrb.mxu2 %v4182_v15  ;;  %863 = vmatpush.msrb.mxu3 %v862_v5  ;;  %v4324_v4 = vsub.f32 %v281_v11, %v4306_v27  ;;  %v891_v5 = vsub.f32 %v4301_v53, %v890_v10 }
  0x8d   : > { %698 = vmatpush.msrb.mxu0 %v6225_v19  ;;  %735 = vmatpush.msrb.mxu1 %v3946_v25  ;;  %v874_v25 = vand.u32 4294901760, %v873_v16  ;;  %v327_v16 = vld [vmem:[%s3892_s11 + $0x138] sm:$0xff] }
  0x8e   : > { %778 = vmatpush.msrb.mxu2 %v4195_v0  ;;  %869 = vmatpush.msrb.mxu3 %v868_v17  ;;  %v791_v11 = vand.u32 4294901760, %v4324_v4 }
  0x8f   : > { %702 = vmatpush.msrb.mxu0 %v6226_v44  ;;  %737 = vmatpush.msrb.mxu1 %v3951_v28  ;;  %v885_v28 = vsub.f32 %v4287_v42, %v884_v9 }
  0x90   : > { %780 = vmatpush.msrb.mxu2 %v4208_v45  ;;  %875 = vmatpush.msrb.mxu3 %v874_v25  ;;  %v4496_v25 = vand.u32 4294901760, %v327_v16 }
  0x91   : > { %706 = vmatpush.msrb.mxu0 %v6227_v6  ;;  %739 = vmatpush.msrb.mxu1 %v3970_v35  ;;  %v880_v35 = vand.u32 4294901760, %v879_v1  ;;  %v886_v49 = vand.u32 4294901760, %v885_v28 }
  0x92   : > { %782 = vmatpush.msrb.mxu2 %v4221_v47  ;;  %453 = vmatmul.f32.vlgmr.msra.gmra.mxu0 %v452_v26  ;;  %v4510_v26 = vand.u32 4294901760, %v326_v20 }
  0x93   : > { %710 = vmatpush.msrb.mxu0 %v6228_v52  ;;  %741 = vmatpush.msrb.mxu1 %v3982_v41  ;;  %v892_v41 = vand.u32 4294901760, %v891_v5  ;;  %v324_v52 = vld [vmem:[%s3892_s11 + $0x120] sm:$0xff] }
  0x94   : > { %784 = vmatpush.msrb.mxu2 %v4246_v3  ;;  %881 = vmatpush.msrb.mxu3 %v880_v35 }
  0x95   : > { %714 = vmatpush.msrb.mxu0 %v6229_v39  ;;  %743 = vmatpush.msrb.mxu1 %v4000_v50  ;;  %v792_v50 = vsub.f32 %v4324_v4, %v791_v11 }
  0x96   : > { %786 = vmatpush.msrb.mxu2 %v4262_v22  ;;  %887 = vmatpush.msrb.mxu3 %v886_v49  ;;  %v4527_v49 = vsub.f32 %v327_v16, %v4496_v25 }
  0x97   : > { %901 = vmatpush.msra.mxu0 %v4070_v43  ;;  %745 = vmatpush.msrb.mxu1 %v4016_v57  ;;  %v6230_v57 = vand.u32 4294901760, %v4070_v43  ;;  %v793_v55 = vand.u32 4294901760, %v792_v50  ;;  %v6233_v43 = vand.u32 4294901760, %v4106_v38 }
  0x98   : > { %608 = vmatmul.f32.vlgmr.msra.gmra.mxu2 %v4260_v32  ;;  %647 = vmatmul.f32.vlgmr.msra.gmra.mxu3 %v450_v59  ;;  %v6232_v32 = vld [vmem:[#allocation17_spill] sm:$0xff] }
  0x99   : > { %904 = vmatpush.msra.mxu0 %v4086_v56  ;;  %747 = vmatpush.msrb.mxu1 %v4027_v63  ;;  %v6231_v63 = vand.u32 4294901760, %v4086_v56 }
  0x9a   : > { %788 = vmatpush.msrb.mxu2 %v4279_v46  ;;  %893 = vmatpush.msrb.mxu3 %v892_v41  ;;  %v323_v41 = vld [vmem:[%s3892_s11 + $0x118] sm:$0xff] }
  0x9b   : > { %907 = vmatpush.msra.mxu0 %v4106_v38  ;;  %749 = vmatpush.msrb.mxu1 %v4044_v18  ;;  %v6234_v18 = vand.u32 4294901760, %v4120_v58 }
  0x9c   : > { %995 = vmatpush.msra.mxu2 %v6230_v57  ;;  %554 = vmatmul.f32.vlgmr.msra.gmra.mxu1 %v4235_v13  ;;  %v4536_v57 = vand.u32 4294901760, %v324_v52 }
  0x9d   : > { %910 = vmatpush.msra.mxu0 %v4120_v58  ;;  %1062 = vmatpush.msra.mxu3 %v4038_v8  ;;  %v6236_v58 = vand.u32 4294901760, %v4154_v24 }
  0x9e   : > { %999 = vmatpush.msra.mxu2 %v6231_v63  ;;  %751 = vmatpush.msrb.mxu1 %v6232_v32 }
  0x9f   : > { %913 = vmatpush.msra.mxu0 %v4138_v33  ;;  %1064 = vmatpush.msra.mxu3 %v4053_v31 }
  0xa0   : > { %954 = vmatpush.msra.mxu1 %v4038_v8  ;;  %1003 = vmatpush.msra.mxu2 %v6233_v43  ;;  %v6235_v8 = vand.u32 4294901760, %v4138_v33  ;;  %v6237_v33 = vand.u32 4294901760, %v4160_v23  ;;  %v322_v43 = vld [vmem:[%s3892_s11 + $0x110] sm:$0xff] }
  0xa1   : > { %794 = vmatmul.f32.vlgmr.msrb.gmra.mxu2 %v793_v55  ;;  %916 = vmatpush.msra.mxu0 %v4154_v24  ;;  %v335_v24 = vld [vmem:[%s3892_s11 + $0x178] sm:$0xff]  ;;  %v4540_v55 = vsub.f32 %v326_v20, %v4510_v26 }
  0xa2   : > { %956 = vmatpush.msra.mxu1 %v4053_v31  ;;  %1007 = vmatpush.msra.mxu2 %v6234_v18  ;;  %v6238_v31 = vand.u32 4294901760, %v4174_v62  ;;  %v4402_v38 = vand.u32 4294901760, %v335_v24 }
  0xa3   : > { %1066 = vmatpush.msra.mxu3 %v4078_v54  ;;  %716 = vmatmul.f32.vlgmr.msrb.gmra.mxu0 %v4235_v13 }
  0xa4   : > { %895 = vmatmul.f32.vlgmr.msrb.gmra.mxu3 %v4306_v27  ;;  %919 = vmatpush.msra.mxu0 %v4160_v23  ;;  %v6239_v23 = vand.u32 4294901760, %v4193_v30 }
  0xa5   : > { %958 = vmatpush.msra.mxu1 %v4078_v54  ;;  %1011 = vmatpush.msra.mxu2 %v6235_v8  ;;  %v6241_v54 = vand.u32 4294901760, %v4219_v48 }
  0xa6   : > { %1068 = vmatpush.msra.mxu3 %v4094_v12  ;;  %753 = vmatmul.f32.vlgmr.msrb.gmra.mxu1 %v4235_v13 }
  0xa7   : > { %922 = vmatpush.msra.mxu0 %v4174_v62  ;;  %960 = vmatpush.msra.mxu1 %v4094_v12  ;;  %v332_v12 = vld [vmem:[%s3892_s11 + $0x160] sm:$0xff] }
  0xa8   : > { %1015 = vmatpush.msra.mxu2 %v6236_v58  ;;  %1070 = vmatpush.msra.mxu3 %v4108_v7  ;;  %v4429_v62 = vand.u32 4294901760, %v332_v12  ;;  %v4551_v58 = vand.u32 4294901760, %v323_v41 }
  0xa9   : > { %925 = vmatpush.msra.mxu0 %v4193_v30  ;;  %962 = vmatpush.msra.mxu1 %v4108_v7  ;;  %v6240_v7 = vand.u32 4294901760, %v4206_v34  ;;  %v333_v30 = vld [vmem:[%s3892_s11 + $0x168] sm:$0xff] }
  0xaa   : > { %1019 = vmatpush.msra.mxu2 %v6237_v33  ;;  %1072 = vmatpush.msra.mxu3 %v4122_v51  ;;  %v6131_v33 = vand.u32 4294901760, %v4527_v49 }
  0xab   : > { %928 = vmatpush.msra.mxu0 %v4206_v34  ;;  %964 = vmatpush.msra.mxu1 %v4122_v51  ;;  %v334_v51 = vld [vmem:[%s3892_s11 + $0x170] sm:$0xff] }
  0xac   : > { %1023 = vmatpush.msra.mxu2 %v6238_v31  ;;  %1074 = vmatpush.msra.mxu3 %v4130_v61  ;;  %v4410_v56 = vand.u32 4294901760, %v334_v51  ;;  %v330_v34 = vld [vmem:[%s3892_s11 + $0x150] sm:$0xff] }
  0xad   : > { %931 = vmatpush.msra.mxu0 %v4219_v48  ;;  %966 = vmatpush.msra.mxu1 %v4130_v61  ;;  %v4418_v61 = vand.u32 4294901760, %v333_v30 }
  0xae   : > { %1027 = vmatpush.msra.mxu2 %v6239_v23  ;;  %1076 = vmatpush.msra.mxu3 %v4145_v2 }
  0xaf   : > { %934 = vmatpush.msra.mxu0 %v4233_v60  ;;  %968 = vmatpush.msra.mxu1 %v4145_v2  ;;  %v4421_v2 = vsub.f32 %v335_v24, %v4402_v38  ;;  %v4444_v48 = vsub.f32 %v333_v30, %v4418_v61  ;;  %v4567_v30 = vsub.f32 %v324_v52, %v4536_v57 }
  0xb0   : > { %1031 = vmatpush.msra.mxu2 %v6240_v7  ;;  %1078 = vmatpush.msra.mxu3 %v4168_v14  ;;  %v6130_v7 = vand.u32 4294901760, %v4540_v55 }
  0xb1   : > { %937 = vmatpush.msra.mxu0 %v4249_v37  ;;  %970 = vmatpush.msra.mxu1 %v4168_v14  ;;  %v331_v14 = vld [vmem:[%s3892_s11 + $0x158] sm:$0xff]  ;;  %v4448_v37 = vand.u32 4294901760, %v330_v34 }
  0xb2   : > { %1035 = vmatpush.msra.mxu2 %v6241_v54  ;;  %1080 = vmatpush.msra.mxu3 %v4182_v15  ;;  %v4437_v13 = vand.u32 4294901760, %v331_v14  ;;  %v321_v54 = vld [vmem:[%s3892_s11 + $0x108] sm:$0xff] }
  0xb3   : > { %940 = vmatpush.msra.mxu0 %v4274_v36  ;;  %972 = vmatpush.msra.mxu1 %v4182_v15  ;;  %v4432_v15 = vsub.f32 %v334_v51, %v4410_v56  ;;  %v4563_v51 = vand.u32 4294901760, %v322_v43  ;;  %v4586_v16 = vand.u32 4294901760, %v321_v54 }
  0xb4   : > { %1039 = vmatpush.msra.mxu2 %v866_v21  ;;  %1082 = vmatpush.msra.mxu3 %v4195_v0  ;;  %v4456_v21 = vsub.f32 %v332_v12, %v4429_v62 }
  0xb5   : > { %943 = vmatpush.msra.mxu0 %v4287_v42  ;;  %974 = vmatpush.msra.mxu1 %v4195_v0  ;;  %v1141_v0 = vand.u32 4294901760, %v4421_v2  ;;  %v1147_v60 = vand.u32 4294901760, %v4432_v15  ;;  %v1153_v42 = vand.u32 4294901760, %v4444_v48 }
  0xb6   : > { %1043 = vmatpush.msra.mxu2 %v872_v29  ;;  %1084 = vmatpush.msra.mxu3 %v4208_v45  ;;  %v328_v29 = vld [vmem:[%s3892_s11 + $0x140] sm:$0xff] }
  0xb7   : > { %946 = vmatpush.msra.mxu0 %v4301_v53  ;;  %976 = vmatpush.msra.mxu1 %v4208_v45  ;;  %v329_v45 = vld [vmem:[%s3892_s11 + $0x148] sm:$0xff]  ;;  %v1142_v36 = vsub.f32 %v4421_v2, %v1141_v0  ;;  %v4484_v19 = vand.u32 4294901760, %v328_v29  ;;  %v6139_v53 = vand.u32 4294901760, %v4456_v21  ;;  %v1154_v44 = vsub.f32 %v4444_v48, %v1153_v42 }
  0xb8   : > { %1047 = vmatpush.msra.mxu2 %v878_v40  ;;  %1086 = vmatpush.msra.mxu3 %v4221_v47  ;;  %v4470_v59 = vand.u32 4294901760, %v329_v45  ;;  %v1148_v40 = vsub.f32 %v4432_v15, %v1147_v60 }
  0xb9   : > { %949 = vmatmul.f32.vlgmr.msra.gmra.mxu0 %v4324_v4  ;;  %978 = vmatpush.msra.mxu1 %v4221_v47  ;;  %v4461_v47 = vsub.f32 %v331_v14, %v4437_v13  ;;  %v4513_v28 = vsub.f32 %v328_v29, %v4484_v19  ;;  %v1155_v35 = vand.u32 4294901760, %v1154_v44  ;;  %v282_v4 = vld [vmem:[#allocation2 + $0x10] sm:$0xff]  ;;  %v4581_v29 = vsub.f32 %v323_v41, %v4551_v58 }
  0xba   : > { %1099 = vmatpush.msrb.mxu0 %v4402_v38  ;;  %1051 = vmatpush.msra.mxu2 %v884_v9  ;;  %v1143_v9 = vand.u32 4294901760, %v1142_v36  ;;  %v4499_v1 = vsub.f32 %v329_v45, %v4470_v59  ;;  %v1149_v6 = vand.u32 4294901760, %v1148_v40  ;;  %v4545_v18 = vand.u32 4294901760, %v282_v4  ;;  %v351_v36 = vld [vmem:[%s3892_s11 + $0x1f8] sm:$0xff]  ;;  %v320_v40 = vld [vmem:[%s3892_s11 + $0x100] sm:$0xff] }
  0xbb   : > { %1088 = vmatpush.msra.mxu3 %v4246_v3  ;;  %980 = vmatpush.msra.mxu1 %v4246_v3  ;;  %v4476_v3 = vsub.f32 %v330_v34, %v4448_v37  ;;  %v6137_v17 = vand.u32 4294901760, %v4461_v47  ;;  %v6132_v63 = vand.u32 4294901760, %v4513_v28  ;;  %v1190_v34 = vsub.f32 %v4527_v49, %v6131_v33 }
  0xbc   : > { %1101 = vmatpush.msrb.mxu0 %v4410_v56  ;;  %1055 = vmatpush.msra.mxu2 %v890_v10  ;;  %v1160_v10 = vsub.f32 %v4456_v21, %v6139_v53  ;;  %v6134_v5 = vand.u32 4294901760, %v4499_v1  ;;  %v4573_v12 = vsub.f32 %v282_v4, %v4545_v18  ;;  %v6127_v44 = vand.u32 4294901760, %v4567_v30  ;;  %v343_v53 = vld [vmem:[%s3892_s11 + $0x1b8] sm:$0xff] }
  0xbd   : > { %1090 = vmatpush.msra.mxu3 %v4262_v22  ;;  %1057 = vmatmul.f32.vlgmr.msra.gmra.mxu2 %v4306_v27  ;;  %v1184_v23 = vsub.f32 %v4513_v28, %v6132_v63  ;;  %v1191_v52 = vand.u32 4294901760, %v1190_v34  ;;  %v4607_v4 = vand.u32 4294901760, %v320_v40  ;;  %v4613_v41 = vsub.f32 %v321_v54, %v4586_v16 }
  0xbe   : > { %1103 = vmatpush.msrb.mxu0 %v4418_v61  ;;  %1242 = vmatpush.msrb.mxu2 %v4421_v2  ;;  %v1161_v50 = vand.u32 4294901760, %v1160_v10  ;;  %v1178_v8 = vsub.f32 %v4499_v1, %v6134_v5  ;;  %v4600_v10 = vand.u32 4294901760, %v351_v36 }
  0xbf   : > { %982 = vmatpush.msra.mxu1 %v4262_v22  ;;  %1092 = vmatpush.msra.mxu3 %v4279_v46  ;;  %v6135_v22 = vand.u32 4294901760, %v4476_v3  ;;  %v1185_v20 = vand.u32 4294901760, %v1184_v23  ;;  %v348_v23 = vld [vmem:[%s3892_s11 + $0x1e0] sm:$0xff] }
  0xc0   : > { %1094 = vmatmul.f32.vlgmr.msra.gmra.mxu3 %v4306_v27  ;;  %1105 = vmatpush.msrb.mxu0 %v4429_v62  ;;  %v325_v27 = vld [vmem:[%s3892_s11 + $0x128] sm:$0xff]  ;;  %v1179_v14 = vand.u32 4294901760, %v1178_v8 }
  0xc1   : > { %1245 = vmatpush.msrb.mxu2 %v4432_v15  ;;  %1295 = vmatpush.msrb.mxu3 %v4402_v38  ;;  %v4523_v39 = vand.u32 4294901760, %v325_v27  ;;  %v342_v15 = vld [vmem:[%s3892_s11 + $0x1b0] sm:$0xff] }
  0xc2   : > { %984 = vmatpush.msra.mxu1 %v4279_v46  ;;  %1107 = vmatpush.msrb.mxu0 %v4437_v13  ;;  %v1166_v46 = vsub.f32 %v4461_v47, %v6137_v17  ;;  %v344_v17 = vld [vmem:[%s3892_s11 + $0x1c0] sm:$0xff] }
  0xc3   : > { %988 = vmatmul.f32.vlgmr.msra.gmra.mxu1 %v791_v11  ;;  %1248 = vmatpush.msrb.mxu2 %v4444_v48  ;;  %v1172_v11 = vsub.f32 %v4476_v3, %v6135_v22  ;;  %v4555_v31 = vsub.f32 %v325_v27, %v4523_v39  ;;  %v4595_v27 = vsub.f32 %v322_v43, %v4563_v51 }
  0xc4   : > { %1144 = vmatpush.msrb.mxu1 %v1143_v9  ;;  %1297 = vmatpush.msrb.mxu3 %v4410_v56  ;;  %v1167_v32 = vand.u32 4294901760, %v1166_v46  ;;  %v1196_v9 = vsub.f32 %v4540_v55, %v6130_v7  ;;  %v350_v46 = vld [vmem:[%s3892_s11 + $0x1f0] sm:$0xff]  ;;  %v1208_v43 = vsub.f32 %v4567_v30, %v6127_v44 }
  0xc5   : > { %1109 = vmatpush.msrb.mxu0 %v4448_v37  ;;  %1251 = vmatpush.msrb.mxu2 %v4456_v21  ;;  %v1173_v24 = vand.u32 4294901760, %v1172_v11  ;;  %v6128_v45 = vand.u32 4294901760, %v4555_v31  ;;  %v6129_v11 = vand.u32 4294901760, %v4581_v29  ;;  %v6133_v8 = vand.u32 4294901760, %v4595_v27 }
  0xc6   : > { %1150 = vmatpush.msrb.mxu1 %v1149_v6  ;;  %1299 = vmatpush.msrb.mxu3 %v4418_v61  ;;  %v1132_v6 = vand.u32 4294901760, %v4573_v12 }
  0xc7   : > { %1111 = vmatpush.msrb.mxu0 %v4470_v59  ;;  %1254 = vmatpush.msrb.mxu2 %v4461_v47 }
  0xc8   : > { %1156 = vmatpush.msrb.mxu1 %v1155_v35  ;;  %1301 = vmatpush.msrb.mxu3 %v4429_v62  ;;  %v1202_v35 = vsub.f32 %v4555_v31, %v6128_v45  ;;  %v1133_v54 = vsub.f32 %v4573_v12, %v1132_v6  ;;  %v347_v45 = vld [vmem:[%s3892_s11 + $0x1d8] sm:$0xff] }
  0xc9   : > { %1113 = vmatpush.msrb.mxu0 %v4484_v19  ;;  %1257 = vmatpush.msrb.mxu2 %v4476_v3  ;;  %v4657_v63 = vand.u32 4294901760, %v347_v45 }
  0xca   : > { %1162 = vmatpush.msrb.mxu1 %v1161_v50  ;;  %1303 = vmatpush.msrb.mxu3 %v4437_v13  ;;  %v349_v50 = vld [vmem:[%s3892_s11 + $0x1e8] sm:$0xff]  ;;  %v1203_v34 = vand.u32 4294901760, %v1202_v35  ;;  %v1209_v35 = vand.u32 4294901760, %v1208_v43  ;;  %v1134_v7 = vand.u32 4294901760, %v1133_v54 }
  0xcb   : > { %1115 = vmatpush.msrb.mxu0 %v4496_v25  ;;  %1260 = vmatpush.msrb.mxu2 %v4499_v1  ;;  %v4639_v44 = vand.u32 4294901760, %v349_v50 }
  0xcc   : > { %1168 = vmatpush.msrb.mxu1 %v1167_v32  ;;  %1305 = vmatpush.msrb.mxu3 %v4448_v37  ;;  %v1197_v32 = vand.u32 4294901760, %v1196_v9  ;;  %v4637_v9 = vsub.f32 %v320_v40, %v4607_v4  ;;  %v1220_v40 = vsub.f32 %v4595_v27, %v6133_v8 }
  0xcd   : > { %1117 = vmatpush.msrb.mxu0 %v4510_v26  ;;  %1263 = vmatpush.msrb.mxu2 %v4513_v28 }
  0xce   : > { %1174 = vmatpush.msrb.mxu1 %v1173_v24  ;;  %1307 = vmatpush.msrb.mxu3 %v4470_v59  ;;  %v4621_v24 = vand.u32 4294901760, %v350_v46  ;;  %v6140_v8 = vand.u32 4294901760, %v4637_v9 }
  0xcf   : > { %1119 = vmatpush.msrb.mxu0 %v4523_v39  ;;  %1266 = vmatpush.msrb.mxu2 %v4527_v49 }
  0xd0   : > { %1180 = vmatpush.msrb.mxu1 %v1179_v14  ;;  %1309 = vmatpush.msrb.mxu3 %v4484_v19  ;;  %v4630_v14 = vsub.f32 %v351_v36, %v4600_v10  ;;  %v6136_v36 = vand.u32 4294901760, %v4613_v41 }
  0xd1   : > { %1121 = vmatpush.msrb.mxu0 %v4536_v57  ;;  %1269 = vmatpush.msrb.mxu2 %v4540_v55 }
  0xd2   : > { %1186 = vmatpush.msrb.mxu1 %v1185_v20  ;;  %1311 = vmatpush.msrb.mxu3 %v4496_v25  ;;  %v1214_v20 = vsub.f32 %v4581_v29, %v6129_v11  ;;  %v4652_v11 = vsub.f32 %v350_v46, %v4621_v24  ;;  %v6138_v33 = vand.u32 4294901760, %v4630_v14  ;;  %v4663_v46 = vsub.f32 %v349_v50, %v4639_v44 }
  0xd3   : > { %1123 = vmatpush.msrb.mxu0 %v4551_v58  ;;  %1272 = vmatpush.msrb.mxu2 %v4555_v31  ;;  %v1226_v54 = vsub.f32 %v4613_v41, %v6136_v36 }
  0xd4   : > { %1192 = vmatpush.msrb.mxu1 %v1191_v52  ;;  %1313 = vmatpush.msrb.mxu3 %v4510_v26  ;;  %v4645_v52 = vand.u32 4294901760, %v348_v23  ;;  %v1215_v43 = vand.u32 4294901760, %v1214_v20  ;;  %v1221_v20 = vand.u32 4294901760, %v1220_v40  ;;  %v6141_v22 = vand.u32 4294901760, %v4652_v11 }
  0xd5   : > { %1125 = vmatpush.msrb.mxu0 %v4563_v51  ;;  %1275 = vmatpush.msrb.mxu2 %v4567_v30  ;;  %v1483_v36 = vsub.f32 %v4630_v14, %v6138_v33 }
  0xd6   : > { %1198 = vmatpush.msrb.mxu1 %v1197_v32  ;;  %1315 = vmatpush.msrb.mxu3 %v4523_v39  ;;  %v346_v32 = vld [vmem:[%s3892_s11 + $0x1d0] sm:$0xff]  ;;  %v4671_v5 = vsub.f32 %v348_v23, %v4645_v52  ;;  %v4683_v23 = vsub.f32 %v347_v45, %v4657_v63  ;;  %v1227_v45 = vand.u32 4294901760, %v1226_v54  ;;  %v1489_v2 = vsub.f32 %v4652_v11, %v6141_v22 }
  0xd7   : > { %1127 = vmatpush.msrb.mxu0 %v4586_v16  ;;  %1278 = vmatpush.msrb.mxu2 %v4581_v29  ;;  %v4676_v50 = vand.u32 4294901760, %v346_v32  ;;  %v1484_v54 = vand.u32 4294901760, %v1483_v36  ;;  %v4721_v22 = vand.u32 4294901760, %v343_v53  ;;  %v6242_v36 = vand.u32 4294901760, %v4456_v21 }
  0xd8   : > { %1204 = vmatpush.msrb.mxu1 %v1203_v34  ;;  %1317 = vmatpush.msrb.mxu3 %v4536_v57  ;;  %v345_v34 = vld [vmem:[%s3892_s11 + $0x1c8] sm:$0xff]  ;;  %v6143_v33 = vand.u32 4294901760, %v4671_v5  ;;  %v6243_v21 = vand.u32 4294901760, %v4461_v47 }
  0xd9   : > { %1129 = vmatpush.msrb.mxu0 %v4607_v4  ;;  %1281 = vmatpush.msrb.mxu2 %v4595_v27  ;;  %v4692_v40 = vand.u32 4294901760, %v345_v34 }
  0xda   : > { %1210 = vmatpush.msrb.mxu1 %v1209_v35  ;;  %1319 = vmatpush.msrb.mxu3 %v4551_v58  ;;  %v1232_v35 = vsub.f32 %v4637_v9, %v6140_v8  ;;  %v6144_v8 = vand.u32 4294901760, %v4683_v23  ;;  %v1501_v48 = vsub.f32 %v4671_v5, %v6143_v33 }
  0xdb   : > { %1135 = vmatmul.f32.vlgmr.msrb.gmra.mxu0 %v1134_v7  ;;  %1284 = vmatpush.msrb.mxu2 %v4613_v41  ;;  %v6142_v7 = vand.u32 4294901760, %v4663_v46 }
  0xdc   : > { %1336 = vmatpush.msra.mxu0 %v1141_v0  ;;  %1216 = vmatpush.msrb.mxu1 %v1215_v43  ;;  %v4704_v0 = vsub.f32 %v346_v32, %v4676_v50  ;;  %v4706_v43 = vand.u32 4294901760, %v344_v17 }
  0xdd   : > { %1321 = vmatpush.msrb.mxu3 %v4563_v51  ;;  %1287 = vmatpush.msrb.mxu2 %v4637_v9  ;;  %v1495_v32 = vsub.f32 %v4663_v46, %v6142_v7 }
  0xde   : > { %1340 = vmatpush.msra.mxu0 %v1147_v60  ;;  %1222 = vmatpush.msrb.mxu1 %v1221_v20  ;;  %v1233_v60 = vand.u32 4294901760, %v1232_v35  ;;  %v4719_v20 = vsub.f32 %v345_v34, %v4692_v40  ;;  %v1490_v35 = vand.u32 4294901760, %v1489_v2  ;;  %v4734_v7 = vsub.f32 %v344_v17, %v4706_v43  ;;  %v339_v34 = vld [vmem:[%s3892_s11 + $0x198] sm:$0xff] }
  0xdf   : > { %1323 = vmatpush.msrb.mxu3 %v4586_v16  ;;  %1290 = vmatmul.f32.vlgmr.msrb.gmra.mxu2 %v4573_v12  ;;  %v1507_v12 = vsub.f32 %v4683_v23, %v6144_v8  ;;  %v1496_v2 = vand.u32 4294901760, %v1495_v32  ;;  %v4747_v17 = vsub.f32 %v343_v53, %v4721_v22  ;;  %v6244_v47 = vand.u32 4294901760, %v4704_v0 }
  0xe0   : > { %1344 = vmatpush.msra.mxu0 %v1153_v42  ;;  %1440 = vmatpush.msra.mxu2 %v4600_v10  ;;  %v341_v42 = vld [vmem:[%s3892_s11 + $0x1a8] sm:$0xff]  ;;  %v6146_v32 = vand.u32 4294901760, %v4734_v7  ;;  %v6245_v8 = vand.u32 4294901760, %v4476_v3  ;;  %v338_v3 = vld [vmem:[%s3892_s11 + $0x190] sm:$0xff] }
  0xe1   : > { %1228 = vmatpush.msrb.mxu1 %v1227_v45  ;;  %1325 = vmatpush.msrb.mxu3 %v4607_v4  ;;  %v4736_v45 = vand.u32 4294901760, %v342_v15  ;;  %v4749_v33 = vand.u32 4294901760, %v341_v42 }
  0xe2   : > { %1329 = vmatmul.f32.vlgmr.msrb.gmra.mxu3 %v1132_v6  ;;  %1348 = vmatpush.msra.mxu0 %v6242_v36  ;;  %v340_v6 = vld [vmem:[%s3892_s11 + $0x1a0] sm:$0xff]  ;;  %v6145_v36 = vand.u32 4294901760, %v4719_v20 }
  0xe3   : > { %1442 = vmatpush.msra.mxu2 %v4621_v24  ;;  %1485 = vmatpush.msra.mxu3 %v1484_v54  ;;  %v1502_v54 = vand.u32 4294901760, %v1501_v48  ;;  %v4760_v53 = vsub.f32 %v342_v15, %v4736_v45  ;;  %v1508_v48 = vand.u32 4294901760, %v1507_v12  ;;  %v4773_v15 = vsub.f32 %v341_v42, %v4749_v33  ;;  %v336_v42 = vld [vmem:[%s3892_s11 + $0x180] sm:$0xff] }
  0xe4   : > { %1234 = vmatpush.msrb.mxu1 %v1233_v60  ;;  %1352 = vmatpush.msra.mxu0 %v6243_v21  ;;  %v1513_v60 = vsub.f32 %v4704_v0, %v6244_v47  ;;  %v4762_v21 = vand.u32 4294901760, %v340_v6  ;;  %v4775_v47 = vand.u32 4294901760, %v339_v34  ;;  %v1525_v12 = vsub.f32 %v4734_v7, %v6146_v32 }
  0xe5   : > { %1236 = vmatmul.f32.vlgmr.msrb.gmra.mxu1 %v4545_v18  ;;  %1444 = vmatpush.msra.mxu2 %v4639_v44 }
  0xe6   : > { %1403 = vmatpush.msra.mxu1 %v4402_v38  ;;  %1491 = vmatpush.msra.mxu3 %v1490_v35  ;;  %v1519_v38 = vsub.f32 %v4719_v20, %v6145_v36  ;;  %v337_v36 = vld [vmem:[%s3892_s11 + $0x188] sm:$0xff]  ;;  %v283_v35 = vld [vmem:[#allocation2 + $0x18] sm:$0xff]  ;;  %v4801_v32 = vsub.f32 %v339_v34, %v4775_v47 }
  0xe7   : > { %1356 = vmatpush.msra.mxu0 %v6245_v8  ;;  %1446 = vmatpush.msra.mxu2 %v4645_v52  ;;  %v6246_v8 = vand.u32 4294901760, %v4499_v1  ;;  %v6247_v1 = vand.u32 4294901760, %v4513_v28  ;;  %v6249_v28 = vand.u32 4294901760, %v4527_v49 }
  0xe8   : > { %1405 = vmatpush.msra.mxu1 %v4410_v56  ;;  %1497 = vmatpush.msra.mxu3 %v1496_v2  ;;  %v1514_v56 = vand.u32 4294901760, %v1513_v60  ;;  %v4787_v2 = vsub.f32 %v340_v6, %v4762_v21  ;;  %v6248_v60 = vand.u32 4294901760, %v4747_v17  ;;  %v6251_v6 = vand.u32 4294901760, %v4540_v55 }
  0xe9   : > { %1360 = vmatpush.msra.mxu0 %v6246_v8  ;;  %1448 = vmatpush.msra.mxu2 %v4657_v63  ;;  %v6253_v55 = vand.u32 4294901760, %v4555_v31 }
  0xea   : > { %1407 = vmatpush.msra.mxu1 %v4418_v61  ;;  %1503 = vmatpush.msra.mxu3 %v1502_v54  ;;  %v4793_v61 = vand.u32 4294901760, %v338_v3  ;;  %v1520_v54 = vand.u32 4294901760, %v1519_v38  ;;  %v1531_v8 = vsub.f32 %v4747_v17, %v6248_v60  ;;  %v6250_v38 = vand.u32 4294901760, %v4760_v53 }
  0xeb   : > { %1364 = vmatpush.msra.mxu0 %v6247_v1  ;;  %1450 = vmatpush.msra.mxu2 %v4676_v50  ;;  %v4807_v1 = vand.u32 4294901760, %v337_v36  ;;  %v1548_v34 = vand.u32 4294901760, %v4787_v2 }
  0xec   : > { %1409 = vmatpush.msra.mxu1 %v4429_v62  ;;  %1509 = vmatpush.msra.mxu3 %v1508_v48  ;;  %v4809_v62 = vand.u32 4294901760, %v283_v35  ;;  %v1526_v48 = vand.u32 4294901760, %v1525_v12  ;;  %v1537_v60 = vsub.f32 %v4760_v53, %v6250_v38  ;;  %v4820_v49 = vsub.f32 %v338_v3, %v4793_v61 }
  0xed   : > { %1368 = vmatpush.msra.mxu0 %v6249_v28  ;;  %1452 = vmatpush.msra.mxu2 %v4692_v40  ;;  %v4822_v28 = vand.u32 4294901760, %v336_v42  ;;  %v1554_v38 = vand.u32 4294901760, %v4801_v32  ;;  %v4833_v3 = vsub.f32 %v337_v36, %v4807_v1 }
  0xee   : > { %1411 = vmatpush.msra.mxu1 %v4437_v13  ;;  %1515 = vmatpush.msra.mxu3 %v1514_v56  ;;  %v1532_v13 = vand.u32 4294901760, %v1531_v8  ;;  %v6252_v56 = vand.u32 4294901760, %v4773_v15  ;;  %v6254_v8 = vand.u32 4294901760, %v4567_v30  ;;  %v1560_v31 = vand.u32 4294901760, %v4820_v49 }
  0xef   : > { %1372 = vmatpush.msra.mxu0 %v6251_v6  ;;  %1454 = vmatpush.msra.mxu2 %v4706_v43  ;;  %v4836_v6 = vsub.f32 %v283_v35, %v4809_v62  ;;  %v4847_v36 = vsub.f32 %v336_v42, %v4822_v28  ;;  %v1555_v35 = vsub.f32 %v4801_v32, %v1554_v38  ;;  %v1566_v30 = vand.u32 4294901760, %v4833_v3 }
  0xf0   : > { %1413 = vmatpush.msra.mxu1 %v4448_v37  ;;  %1521 = vmatpush.msra.mxu3 %v1520_v54  ;;  %v1543_v12 = vsub.f32 %v4773_v15, %v6252_v56  ;;  %v1538_v37 = vand.u32 4294901760, %v1537_v60  ;;  %v1549_v54 = vsub.f32 %v4787_v2, %v1548_v34 }
  0xf1   : > { %1376 = vmatpush.msra.mxu0 %v6253_v55  ;;  %1456 = vmatpush.msra.mxu2 %v4721_v22  ;;  %v1473_v60 = vand.u32 4294901760, %v4836_v6  ;;  %v1556_v56 = vand.u32 4294901760, %v1555_v35 }
  0xf2   : > { %1415 = vmatpush.msra.mxu1 %v4470_v59  ;;  %1527 = vmatpush.msra.mxu3 %v1526_v48  ;;  %v1544_v59 = vand.u32 4294901760, %v1543_v12  ;;  %v6255_v48 = vand.u32 4294901760, %v4581_v29  ;;  %v1550_v42 = vand.u32 4294901760, %v1549_v54  ;;  %v1561_v29 = vsub.f32 %v4820_v49, %v1560_v31  ;;  %v359_v54 = vld [vmem:[%s3892_s11 + $0x238] sm:$0xff] }
  0xf3   : > { %1380 = vmatpush.msra.mxu0 %v6254_v8  ;;  %1458 = vmatpush.msra.mxu2 %v4736_v45  ;;  %v6257_v12 = vand.u32 4294901760, %v4613_v41 }
  0xf4   : > { %1417 = vmatpush.msra.mxu1 %v4484_v19  ;;  %1533 = vmatpush.msra.mxu3 %v1532_v13  ;;  %v6256_v19 = vand.u32 4294901760, %v4595_v27  ;;  %v1572_v13 = vand.u32 4294901760, %v4847_v36  ;;  %v1474_v27 = vsub.f32 %v4836_v6, %v1473_v60  ;;  %v1562_v41 = vand.u32 4294901760, %v1561_v29 }
  0xf5   : > { %1384 = vmatpush.msra.mxu0 %v6255_v48  ;;  %1460 = vmatpush.msra.mxu2 %v4749_v33 }
  0xf6   : > { %1419 = vmatpush.msra.mxu1 %v4496_v25  ;;  %1539 = vmatpush.msra.mxu3 %v1538_v37  ;;  %v1567_v25 = vsub.f32 %v4833_v3, %v1566_v30  ;;  %v1573_v55 = vsub.f32 %v4847_v36, %v1572_v13 }
  0xf7   : > { %1388 = vmatpush.msra.mxu0 %v6256_v19  ;;  %1462 = vmatpush.msra.mxu2 %v4762_v21 }
  0xf8   : > { %1421 = vmatpush.msra.mxu1 %v4510_v26  ;;  %1545 = vmatpush.msra.mxu3 %v1544_v59  ;;  %v6258_v26 = vand.u32 4294901760, %v4637_v9  ;;  %v1568_v37 = vand.u32 4294901760, %v1567_v25  ;;  %v1574_v9 = vand.u32 4294901760, %v1573_v55  ;;  %v358_v59 = vld [vmem:[%s3892_s11 + $0x230] sm:$0xff]  ;;  %v355_v55 = vld [vmem:[%s3892_s11 + $0x218] sm:$0xff] }
  0xf9   : > { %1392 = vmatpush.msra.mxu0 %v6257_v12  ;;  %1464 = vmatpush.msra.mxu2 %v4775_v47  ;;  %v356_v12 = vld [vmem:[%s3892_s11 + $0x220] sm:$0xff] }
  0xfa   : > { %1423 = vmatpush.msra.mxu1 %v4523_v39  ;;  %1551 = vmatpush.msra.mxu3 %v1550_v42  ;;  %v1475_v39 = vand.u32 4294901760, %v1474_v27 }
  0xfb   : > { %1396 = vmatpush.msra.mxu0 %v6258_v26  ;;  %1466 = vmatpush.msra.mxu2 %v4793_v61 }
  0xfc   : > { %1425 = vmatpush.msra.mxu1 %v4536_v57  ;;  %1557 = vmatpush.msra.mxu3 %v1556_v56  ;;  %v6259_v57 = vand.u32 4294901760, %v4630_v14 }
  0xfd   : > { %1398 = vmatmul.f32.vlgmr.msra.gmra.mxu0 %v4545_v18  ;;  %1468 = vmatpush.msra.mxu2 %v4807_v1 }
  0xfe   : > { %1583 = vmatpush.msrb.mxu0 %v4630_v14  ;;  %1427 = vmatpush.msra.mxu1 %v4551_v58  ;;  %v6260_v58 = vand.u32 4294901760, %v4652_v11 }
  0xff   : > { %1563 = vmatpush.msra.mxu3 %v1562_v41  ;;  %1470 = vmatpush.msra.mxu2 %v4822_v28 }
 0x100   : > { %1586 = vmatpush.msrb.mxu0 %v4652_v11  ;;  %1429 = vmatpush.msra.mxu1 %v4563_v51  ;;  %v6261_v51 = vand.u32 4294901760, %v4663_v46  ;;  %v367_v11 = vld [vmem:[%s3892_s11 + $0x278] sm:$0xff] }
 0x101   : > { %1569 = vmatpush.msra.mxu3 %v1568_v37  ;;  %1476 = vmatmul.f32.vlgmr.msra.gmra.mxu2 %v1475_v39  ;;  %v4944_v14 = vand.u32 4294901760, %v367_v11  ;;  %v5078_v39 = vand.u32 4294901760, %v356_v12 }
 0x102   : > { %1589 = vmatpush.msrb.mxu0 %v4663_v46  ;;  %1677 = vmatpush.msrb.mxu2 %v6259_v57  ;;  %v365_v46 = vld [vmem:[%s3892_s11 + $0x268] sm:$0xff] }
 0x103   : > { %1431 = vmatpush.msra.mxu1 %v4586_v16  ;;  %1575 = vmatpush.msra.mxu3 %v1574_v9  ;;  %v6262_v16 = vand.u32 4294901760, %v4671_v5 }
 0x104   : > { %1577 = vmatmul.f32.vlgmr.msra.gmra.mxu3 %v4809_v62  ;;  %1592 = vmatpush.msrb.mxu0 %v4671_v5  ;;  %v6265_v5 = vand.u32 4294901760, %v4719_v20 }
 0x105   : > { %1681 = vmatpush.msrb.mxu2 %v6260_v58  ;;  %1744 = vmatpush.msrb.mxu3 %v4600_v10 }
 0x106   : > { %1433 = vmatpush.msra.mxu1 %v4607_v4  ;;  %1595 = vmatpush.msrb.mxu0 %v4683_v23  ;;  %v6267_v4 = vand.u32 4294901760, %v4747_v17 }
 0x107   : > { %1435 = vmatmul.f32.vlgmr.msra.gmra.mxu1 %v4545_v18  ;;  %1685 = vmatpush.msrb.mxu2 %v6261_v51  ;;  %v6263_v18 = vand.u32 4294901760, %v4683_v23  ;;  %v364_v23 = vld [vmem:[%s3892_s11 + $0x260] sm:$0xff]  ;;  %v354_v51 = vld [vmem:[%s3892_s11 + $0x210] sm:$0xff] }
 0x108   : > { %1636 = vmatpush.msrb.mxu1 %v4600_v10  ;;  %1746 = vmatpush.msrb.mxu3 %v4621_v24  ;;  %v6264_v10 = vand.u32 4294901760, %v4704_v0 }
 0x109   : > { %1598 = vmatpush.msrb.mxu0 %v4704_v0  ;;  %1689 = vmatpush.msrb.mxu2 %v6262_v16  ;;  %v4971_v0 = vand.u32 4294901760, %v364_v23 }
 0x10a   : > { %1638 = vmatpush.msrb.mxu1 %v4621_v24  ;;  %1748 = vmatpush.msrb.mxu3 %v4639_v44  ;;  %v366_v24 = vld [vmem:[%s3892_s11 + $0x270] sm:$0xff] }
 0x10b   : > { %1601 = vmatpush.msrb.mxu0 %v4719_v20  ;;  %1693 = vmatpush.msrb.mxu2 %v6263_v18  ;;  %v362_v20 = vld [vmem:[%s3892_s11 + $0x250] sm:$0xff] }
 0x10c   : > { %1640 = vmatpush.msrb.mxu1 %v4639_v44  ;;  %1750 = vmatpush.msrb.mxu3 %v4645_v52  ;;  %v6266_v44 = vand.u32 4294901760, %v4734_v7 }
 0x10d   : > { %1604 = vmatpush.msrb.mxu0 %v4734_v7  ;;  %1697 = vmatpush.msrb.mxu2 %v6264_v10  ;;  %v4960_v7 = vand.u32 4294901760, %v365_v46  ;;  %v5093_v10 = vand.u32 4294901760, %v355_v55 }
 0x10e   : > { %1642 = vmatpush.msrb.mxu1 %v4645_v52  ;;  %1752 = vmatpush.msrb.mxu3 %v4657_v63  ;;  %v6269_v52 = vand.u32 4294901760, %v4773_v15 }
 0x10f   : > { %1607 = vmatpush.msrb.mxu0 %v4747_v17  ;;  %1701 = vmatpush.msrb.mxu2 %v6265_v5  ;;  %v4986_v17 = vsub.f32 %v365_v46, %v4960_v7  ;;  %v353_v46 = vld [vmem:[%s3892_s11 + $0x208] sm:$0xff] }
 0x110   : > { %1644 = vmatpush.msrb.mxu1 %v4657_v63  ;;  %1754 = vmatpush.msrb.mxu3 %v4676_v50  ;;  %v6268_v63 = vand.u32 4294901760, %v4760_v53 }
 0x111   : > { %1610 = vmatpush.msrb.mxu0 %v4760_v53  ;;  %1705 = vmatpush.msrb.mxu2 %v6266_v44  ;;  %v361_v53 = vld [vmem:[%s3892_s11 + $0x248] sm:$0xff] }
 0x112   : > { %1646 = vmatpush.msrb.mxu1 %v4676_v50  ;;  %1756 = vmatpush.msrb.mxu3 %v4692_v40  ;;  %v4952_v50 = vand.u32 4294901760, %v366_v24 }
 0x113   : > { %1613 = vmatpush.msrb.mxu0 %v4773_v15  ;;  %1709 = vmatpush.msrb.mxu2 %v6267_v4  ;;  %v4998_v15 = vsub.f32 %v364_v23, %v4971_v0 }
 0x114   : > { %1648 = vmatpush.msrb.mxu1 %v4692_v40  ;;  %1758 = vmatpush.msrb.mxu3 %v4706_v43  ;;  %v4963_v40 = vsub.f32 %v367_v11, %v4944_v14 }
 0x115   : > { %1616 = vmatpush.msrb.mxu0 %v4787_v2  ;;  %1713 = vmatpush.msrb.mxu2 %v6268_v63  ;;  %v5105_v63 = vand.u32 4294901760, %v354_v51 }
 0x116   : > { %1650 = vmatpush.msrb.mxu1 %v4706_v43  ;;  %1760 = vmatpush.msrb.mxu3 %v4721_v22  ;;  %v4974_v43 = vsub.f32 %v366_v24, %v4952_v50 }
 0x117   : > { %1619 = vmatpush.msrb.mxu0 %v4801_v32  ;;  %1717 = vmatpush.msrb.mxu2 %v6269_v52  ;;  %v4991_v32 = vand.u32 4294901760, %v362_v20  ;;  %v5109_v52 = vsub.f32 %v356_v12, %v5078_v39 }
 0x118   : > { %1652 = vmatpush.msrb.mxu1 %v4721_v22  ;;  %1762 = vmatpush.msrb.mxu3 %v4736_v45  ;;  %v363_v22 = vld [vmem:[%s3892_s11 + $0x258] sm:$0xff] }
 0x119   : > { %1622 = vmatpush.msrb.mxu0 %v4820_v49  ;;  %1721 = vmatpush.msrb.mxu2 %v1548_v34  ;;  %v360_v34 = vld [vmem:[%s3892_s11 + $0x240] sm:$0xff]  ;;  %v5012_v49 = vand.u32 4294901760, %v361_v53 }
 0x11a   : > { %1654 = vmatpush.msrb.mxu1 %v4736_v45  ;;  %1764 = vmatpush.msrb.mxu3 %v4749_v33  ;;  %v4980_v45 = vand.u32 4294901760, %v363_v22  ;;  %v5026_v8 = vand.u32 4294901760, %v360_v34 }
 0x11b   : > { %1625 = vmatpush.msrb.mxu0 %v4833_v3  ;;  %1725 = vmatpush.msrb.mxu2 %v1554_v38  ;;  %v1835_v38 = vand.u32 4294901760, %v4986_v17  ;;  %v5018_v3 = vsub.f32 %v362_v20, %v4991_v32  ;;  %v5041_v42 = vsub.f32 %v361_v53, %v5012_v49 }
 0x11c   : > { %1656 = vmatpush.msrb.mxu1 %v4749_v33  ;;  %1766 = vmatpush.msrb.mxu3 %v4762_v21  ;;  %v1823_v33 = vand.u32 4294901760, %v4963_v40  ;;  %v5004_v2 = vsub.f32 %v363_v22, %v4980_v45  ;;  %v5055_v56 = vsub.f32 %v360_v34, %v5026_v8  ;;  %v5123_v34 = vsub.f32 %v355_v55, %v5093_v10 }
 0x11d   : > { %1628 = vmatpush.msrb.mxu0 %v4847_v36  ;;  %1729 = vmatpush.msrb.mxu2 %v1560_v31  ;;  %v6159_v31 = vand.u32 4294901760, %v4998_v15  ;;  %v1836_v48 = vsub.f32 %v4986_v17, %v1835_v38  ;;  %v6154_v26 = vand.u32 4294901760, %v5041_v42 }
 0x11e   : > { %1658 = vmatpush.msrb.mxu1 %v4762_v21  ;;  %1768 = vmatpush.msrb.mxu3 %v4775_v47  ;;  %v1829_v21 = vand.u32 4294901760, %v4974_v43  ;;  %v6157_v36 = vand.u32 4294901760, %v5004_v2  ;;  %v6152_v9 = vand.u32 4294901760, %v5055_v56 }
 0x11f   : > { %1631 = vmatmul.f32.vlgmr.msrb.gmra.mxu0 %v4836_v6  ;;  %1733 = vmatpush.msrb.mxu2 %v1566_v30  ;;  %v5038_v30 = vand.u32 4294901760, %v359_v54  ;;  %v1842_v29 = vsub.f32 %v4998_v15, %v6159_v31  ;;  %v1837_v25 = vand.u32 4294901760, %v1836_v48  ;;  %v284_v6 = vld [vmem:[#allocation2 + $0x20] sm:$0xff]  ;;  %v1860_v18 = vsub.f32 %v5041_v42, %v6154_v26 }
 0x120   : > { %1781 = vmatpush.msra.mxu0 %v4944_v14  ;;  %1660 = vmatpush.msrb.mxu1 %v4775_v47  ;;  %v1824_v47 = vsub.f32 %v4963_v40, %v1823_v33  ;;  %v5087_v16 = vand.u32 4294901760, %v284_v6  ;;  %v1866_v11 = vsub.f32 %v5055_v56, %v6152_v9  ;;  %v6147_v48 = vand.u32 4294901760, %v5109_v52  ;;  %v375_v31 = vld [vmem:[%s3892_s11 + $0x2b8] sm:$0xff] }
 0x121   : > { %1770 = vmatpush.msrb.mxu3 %v4793_v61  ;;  %1737 = vmatpush.msrb.mxu2 %v1572_v13  ;;  %v5052_v13 = vand.u32 4294901760, %v358_v59  ;;  %v5069_v41 = vsub.f32 %v359_v54, %v5038_v30  ;;  %v1843_v37 = vand.u32 4294901760, %v1842_v29  ;;  %v1861_v22 = vand.u32 4294901760, %v1860_v18 }
 0x122   : > { %1783 = vmatpush.msra.mxu0 %v4952_v50  ;;  %1662 = vmatpush.msrb.mxu1 %v4793_v61  ;;  %v1830_v61 = vsub.f32 %v4974_v43, %v1829_v21  ;;  %v1825_v35 = vand.u32 4294901760, %v1824_v47  ;;  %v5115_v23 = vsub.f32 %v284_v6, %v5087_v16  ;;  %v383_v47 = vld [vmem:[%s3892_s11 + $0x2f8] sm:$0xff]  ;;  %v5128_v54 = vand.u32 4294901760, %v353_v46 }
 0x123   : > { %1772 = vmatpush.msrb.mxu3 %v4807_v1  ;;  %1739 = vmatmul.f32.vlgmr.msrb.gmra.mxu2 %v4809_v62  ;;  %v5082_v57 = vsub.f32 %v358_v59, %v5052_v13  ;;  %v6151_v5 = vand.u32 4294901760, %v5069_v41  ;;  %v1867_v59 = vand.u32 4294901760, %v1866_v11  ;;  %v5142_v29 = vand.u32 4294901760, %v383_v47  ;;  %v380_v11 = vld [vmem:[%s3892_s11 + $0x2e0] sm:$0xff] }
 0x124   : > { %1785 = vmatpush.msra.mxu0 %v4960_v7  ;;  %1924 = vmatpush.msra.mxu2 %v4963_v40  ;;  %v1831_v19 = vand.u32 4294901760, %v1830_v61  ;;  %v352_v61 = vld [vmem:[%s3892_s11 + $0x200] sm:$0xff]  ;;  %v5155_v55 = vsub.f32 %v353_v46, %v5128_v54 }
 0x125   : > { %1664 = vmatpush.msrb.mxu1 %v4807_v1  ;;  %1774 = vmatpush.msrb.mxu3 %v4822_v28  ;;  %v6155_v1 = vand.u32 4294901760, %v5018_v3  ;;  %v6150_v24 = vand.u32 4294901760, %v5082_v57  ;;  %v1872_v20 = vsub.f32 %v5069_v41, %v6151_v5  ;;  %v5149_v6 = vand.u32 4294901760, %v352_v61 }
 0x126   : > { %1776 = vmatmul.f32.vlgmr.msrb.gmra.mxu3 %v4809_v62  ;;  %1787 = vmatpush.msra.mxu0 %v4971_v0  ;;  %v357_v62 = vld [vmem:[%s3892_s11 + $0x228] sm:$0xff] }
 0x127   : > { %1927 = vmatpush.msra.mxu2 %v4974_v43  ;;  %1977 = vmatpush.msra.mxu3 %v4944_v14  ;;  %v5065_v27 = vand.u32 4294901760, %v357_v62  ;;  %v1873_v12 = vand.u32 4294901760, %v1872_v20  ;;  %v374_v43 = vld [vmem:[%s3892_s11 + $0x2b0] sm:$0xff] }
 0x128   : > { %1666 = vmatpush.msrb.mxu1 %v4822_v28  ;;  %1789 = vmatpush.msra.mxu0 %v4980_v45  ;;  %v1848_v28 = vsub.f32 %v5004_v2, %v6157_v36  ;;  %v376_v36 = vld [vmem:[%s3892_s11 + $0x2c0] sm:$0xff] }
 0x129   : > { %1670 = vmatmul.f32.vlgmr.msrb.gmra.mxu1 %v1473_v60  ;;  %1930 = vmatpush.msra.mxu2 %v4986_v17  ;;  %v1854_v60 = vsub.f32 %v5018_v3, %v6155_v1  ;;  %v5097_v44 = vsub.f32 %v357_v62, %v5065_v27  ;;  %v5137_v62 = vsub.f32 %v354_v51, %v5105_v63 }
 0x12a   : > { %1826 = vmatpush.msra.mxu1 %v1825_v35  ;;  %1979 = vmatpush.msra.mxu3 %v4952_v50  ;;  %v1849_v58 = vand.u32 4294901760, %v1848_v28  ;;  %v1878_v35 = vsub.f32 %v5082_v57, %v6150_v24  ;;  %v382_v28 = vld [vmem:[%s3892_s11 + $0x2f0] sm:$0xff]  ;;  %v1890_v51 = vsub.f32 %v5109_v52, %v6147_v48 }
 0x12b   : > { %1791 = vmatpush.msra.mxu0 %v4991_v32  ;;  %1933 = vmatpush.msra.mxu2 %v4998_v15  ;;  %v1855_v4 = vand.u32 4294901760, %v1854_v60  ;;  %v6148_v53 = vand.u32 4294901760, %v5097_v44  ;;  %v6149_v60 = vand.u32 4294901760, %v5123_v34  ;;  %v6153_v18 = vand.u32 4294901760, %v5137_v62 }
 0x12c   : > { %1832 = vmatpush.msra.mxu1 %v1831_v19  ;;  %1981 = vmatpush.msra.mxu3 %v4960_v7  ;;  %v1814_v19 = vand.u32 4294901760, %v5115_v23 }
 0x12d   : > { %1793 = vmatpush.msra.mxu0 %v5012_v49  ;;  %1936 = vmatpush.msra.mxu2 %v5004_v2 }
 0x12e   : > { %1838 = vmatpush.msra.mxu1 %v1837_v25  ;;  %1983 = vmatpush.msra.mxu3 %v4971_v0  ;;  %v1884_v25 = vsub.f32 %v5097_v44, %v6148_v53  ;;  %v1815_v46 = vsub.f32 %v5115_v23, %v1814_v19  ;;  %v379_v53 = vld [vmem:[%s3892_s11 + $0x2d8] sm:$0xff] }
 0x12f   : > { %1795 = vmatpush.msra.mxu0 %v5026_v8  ;;  %1939 = vmatpush.msra.mxu2 %v5018_v3  ;;  %v5199_v9 = vand.u32 4294901760, %v379_v53 }
 0x130   : > { %1844 = vmatpush.msra.mxu1 %v1843_v37  ;;  %1985 = vmatpush.msra.mxu3 %v4980_v45  ;;  %v381_v37 = vld [vmem:[%s3892_s11 + $0x2e8] sm:$0xff]  ;;  %v1885_v20 = vand.u32 4294901760, %v1884_v25  ;;  %v1891_v25 = vand.u32 4294901760, %v1890_v51  ;;  %v1816_v24 = vand.u32 4294901760, %v1815_v46 }
 0x131   : > { %1797 = vmatpush.msra.mxu0 %v5038_v30  ;;  %1942 = vmatpush.msra.mxu2 %v5041_v42  ;;  %v5181_v48 = vand.u32 4294901760, %v381_v37 }
 0x132   : > { %1850 = vmatpush.msra.mxu1 %v1849_v58  ;;  %1987 = vmatpush.msra.mxu3 %v4991_v32  ;;  %v1879_v58 = vand.u32 4294901760, %v1878_v35  ;;  %v5179_v35 = vsub.f32 %v352_v61, %v5149_v6  ;;  %v1902_v61 = vsub.f32 %v5137_v62, %v6153_v18 }
 0x133   : > { %1799 = vmatpush.msra.mxu0 %v5052_v13  ;;  %1945 = vmatpush.msra.mxu2 %v5055_v56 }
 0x134   : > { %1856 = vmatpush.msra.mxu1 %v1855_v4  ;;  %1989 = vmatpush.msra.mxu3 %v5012_v49  ;;  %v5163_v4 = vand.u32 4294901760, %v382_v28  ;;  %v6160_v18 = vand.u32 4294901760, %v5179_v35 }
 0x135   : > { %1801 = vmatpush.msra.mxu0 %v5065_v27  ;;  %1948 = vmatpush.msra.mxu2 %v5069_v41 }
 0x136   : > { %1862 = vmatpush.msra.mxu1 %v1861_v22  ;;  %1991 = vmatpush.msra.mxu3 %v5026_v8  ;;  %v5172_v22 = vsub.f32 %v383_v47, %v5142_v29  ;;  %v6156_v47 = vand.u32 4294901760, %v5155_v55 }
 0x137   : > { %1803 = vmatpush.msra.mxu0 %v5078_v39  ;;  %1951 = vmatpush.msra.mxu2 %v5082_v57 }
 0x138   : > { %1868 = vmatpush.msra.mxu1 %v1867_v59  ;;  %1993 = vmatpush.msra.mxu3 %v5038_v30  ;;  %v1896_v59 = vsub.f32 %v5123_v34, %v6149_v60  ;;  %v5194_v60 = vsub.f32 %v382_v28, %v5163_v4  ;;  %v6158_v5 = vand.u32 4294901760, %v5172_v22  ;;  %v5205_v28 = vsub.f32 %v381_v37, %v5181_v48 }
 0x139   : > { %1805 = vmatpush.msra.mxu0 %v5093_v10  ;;  %1954 = vmatpush.msra.mxu2 %v5097_v44  ;;  %v1908_v46 = vsub.f32 %v5155_v55, %v6156_v47 }
 0x13a   : > { %1874 = vmatpush.msra.mxu1 %v1873_v12  ;;  %1995 = vmatpush.msra.mxu3 %v5052_v13  ;;  %v5187_v12 = vand.u32 4294901760, %v380_v11  ;;  %v1897_v51 = vand.u32 4294901760, %v1896_v59  ;;  %v1903_v59 = vand.u32 4294901760, %v1902_v61  ;;  %v6161_v1 = vand.u32 4294901760, %v5194_v60 }
 0x13b   : > { %1807 = vmatpush.msra.mxu0 %v5105_v63  ;;  %1957 = vmatpush.msra.mxu2 %v5109_v52  ;;  %v2165_v47 = vsub.f32 %v5172_v22, %v6158_v5 }
 0x13c   : > { %1880 = vmatpush.msra.mxu1 %v1879_v58  ;;  %1997 = vmatpush.msra.mxu3 %v5065_v27  ;;  %v378_v58 = vld [vmem:[%s3892_s11 + $0x2d0] sm:$0xff]  ;;  %v5213_v26 = vsub.f32 %v380_v11, %v5187_v12  ;;  %v5225_v11 = vsub.f32 %v379_v53, %v5199_v9  ;;  %v1909_v53 = vand.u32 4294901760, %v1908_v46  ;;  %v2171_v40 = vsub.f32 %v5194_v60, %v6161_v1 }
 0x13d   : > { %1809 = vmatpush.msra.mxu0 %v5128_v54  ;;  %1960 = vmatpush.msra.mxu2 %v5123_v34  ;;  %v5218_v37 = vand.u32 4294901760, %v378_v58  ;;  %v2166_v46 = vand.u32 4294901760, %v2165_v47  ;;  %v5263_v1 = vand.u32 4294901760, %v375_v31  ;;  %v6270_v47 = vand.u32 4294901760, %v4998_v15 }
 0x13e   : > { %1886 = vmatpush.msra.mxu1 %v1885_v20  ;;  %1999 = vmatpush.msra.mxu3 %v5078_v39  ;;  %v377_v20 = vld [vmem:[%s3892_s11 + $0x2c8] sm:$0xff]  ;;  %v6163_v5 = vand.u32 4294901760, %v5213_v26  ;;  %v6271_v15 = vand.u32 4294901760, %v5004_v2 }
 0x13f   : > { %1811 = vmatpush.msra.mxu0 %v5149_v6  ;;  %1963 = vmatpush.msra.mxu2 %v5137_v62  ;;  %v5234_v61 = vand.u32 4294901760, %v377_v20 }
 0x140   : > { %1892 = vmatpush.msra.mxu1 %v1891_v25  ;;  %2001 = vmatpush.msra.mxu3 %v5093_v10  ;;  %v1914_v25 = vsub.f32 %v5179_v35, %v6160_v18  ;;  %v6164_v18 = vand.u32 4294901760, %v5225_v11  ;;  %v2183_v17 = vsub.f32 %v5213_v26, %v6163_v5 }
 0x141   : > { %1817 = vmatmul.f32.vlgmr.msra.gmra.mxu0 %v1816_v24  ;;  %1966 = vmatpush.msra.mxu2 %v5155_v55  ;;  %v6162_v24 = vand.u32 4294901760, %v5205_v28 }
 0x142   : > { %2018 = vmatpush.msrb.mxu0 %v1823_v33  ;;  %1898 = vmatpush.msra.mxu1 %v1897_v51  ;;  %v5246_v33 = vsub.f32 %v378_v58, %v5218_v37  ;;  %v5248_v51 = vand.u32 4294901760, %v376_v36 }
 0x143   : > { %2003 = vmatpush.msra.mxu3 %v5105_v63  ;;  %1969 = vmatpush.msra.mxu2 %v5179_v35  ;;  %v2177_v58 = vsub.f32 %v5205_v28, %v6162_v24 }
 0x144   : > { %2022 = vmatpush.msrb.mxu0 %v1829_v21  ;;  %1904 = vmatpush.msra.mxu1 %v1903_v59  ;;  %v1915_v21 = vand.u32 4294901760, %v1914_v25  ;;  %v5261_v59 = vsub.f32 %v377_v20, %v5234_v61  ;;  %v2172_v25 = vand.u32 4294901760, %v2171_v40  ;;  %v5276_v24 = vsub.f32 %v376_v36, %v5248_v51  ;;  %v371_v20 = vld [vmem:[%s3892_s11 + $0x298] sm:$0xff] }
 0x145   : > { %2005 = vmatpush.msra.mxu3 %v5128_v54  ;;  %1972 = vmatmul.f32.vlgmr.msra.gmra.mxu2 %v5115_v23  ;;  %v2189_v23 = vsub.f32 %v5225_v11, %v6164_v18  ;;  %v2178_v40 = vand.u32 4294901760, %v2177_v58  ;;  %v5289_v36 = vsub.f32 %v375_v31, %v5263_v1  ;;  %v6272_v2 = vand.u32 4294901760, %v5246_v33 }
 0x146   : > { %2026 = vmatpush.msrb.mxu0 %v1835_v38  ;;  %2122 = vmatpush.msrb.mxu2 %v5142_v29  ;;  %v373_v38 = vld [vmem:[%s3892_s11 + $0x2a8] sm:$0xff]  ;;  %v6166_v58 = vand.u32 4294901760, %v5276_v24  ;;  %v6273_v18 = vand.u32 4294901760, %v5018_v3  ;;  %v370_v3 = vld [vmem:[%s3892_s11 + $0x290] sm:$0xff] }
 0x147   : > { %1910 = vmatpush.msra.mxu1 %v1909_v53  ;;  %2007 = vmatpush.msra.mxu3 %v5149_v6  ;;  %v5278_v53 = vand.u32 4294901760, %v374_v43  ;;  %v5291_v5 = vand.u32 4294901760, %v373_v38 }
 0x148   : > { %2011 = vmatmul.f32.vlgmr.msra.gmra.mxu3 %v1814_v19  ;;  %2030 = vmatpush.msrb.mxu0 %v6270_v47  ;;  %v372_v19 = vld [vmem:[%s3892_s11 + $0x2a0] sm:$0xff]  ;;  %v6165_v47 = vand.u32 4294901760, %v5261_v59 }
 0x149   : > { %2124 = vmatpush.msrb.mxu2 %v5163_v4  ;;  %2167 = vmatpush.msrb.mxu3 %v2166_v46  ;;  %v2184_v46 = vand.u32 4294901760, %v2183_v17  ;;  %v5302_v31 = vsub.f32 %v374_v43, %v5278_v53  ;;  %v2190_v17 = vand.u32 4294901760, %v2189_v23  ;;  %v5315_v43 = vsub.f32 %v373_v38, %v5291_v5  ;;  %v368_v38 = vld [vmem:[%s3892_s11 + $0x280] sm:$0xff] }
 0x14a   : > { %1916 = vmatpush.msra.mxu1 %v1915_v21  ;;  %2034 = vmatpush.msrb.mxu0 %v6271_v15  ;;  %v2195_v21 = vsub.f32 %v5246_v33, %v6272_v2  ;;  %v5304_v15 = vand.u32 4294901760, %v372_v19  ;;  %v5317_v2 = vand.u32 4294901760, %v371_v20  ;;  %v2207_v23 = vsub.f32 %v5276_v24, %v6166_v58 }
 0x14b   : > { %1918 = vmatmul.f32.vlgmr.msra.gmra.mxu1 %v5087_v16  ;;  %2126 = vmatpush.msrb.mxu2 %v5181_v48 }
 0x14c   : > { %2085 = vmatpush.msrb.mxu1 %v4944_v14  ;;  %2173 = vmatpush.msrb.mxu3 %v2172_v25  ;;  %v2201_v14 = vsub.f32 %v5261_v59, %v6165_v47  ;;  %v369_v47 = vld [vmem:[%s3892_s11 + $0x288] sm:$0xff]  ;;  %v285_v25 = vld [vmem:[#allocation2 + $0x28] sm:$0xff]  ;;  %v5343_v58 = vsub.f32 %v371_v20, %v5317_v2 }
 0x14d   : > { %2038 = vmatpush.msrb.mxu0 %v6273_v18  ;;  %2128 = vmatpush.msrb.mxu2 %v5187_v12  ;;  %v6274_v18 = vand.u32 4294901760, %v5041_v42  ;;  %v6275_v42 = vand.u32 4294901760, %v5055_v56  ;;  %v6277_v56 = vand.u32 4294901760, %v5069_v41 }
 0x14e   : > { %2087 = vmatpush.msrb.mxu1 %v4952_v50  ;;  %2179 = vmatpush.msrb.mxu3 %v2178_v40  ;;  %v2196_v50 = vand.u32 4294901760, %v2195_v21  ;;  %v5329_v40 = vsub.f32 %v372_v19, %v5304_v15  ;;  %v6276_v21 = vand.u32 4294901760, %v5289_v36  ;;  %v6279_v19 = vand.u32 4294901760, %v5082_v57 }
 0x14f   : > { %2042 = vmatpush.msrb.mxu0 %v6274_v18  ;;  %2130 = vmatpush.msrb.mxu2 %v5199_v9  ;;  %v6281_v57 = vand.u32 4294901760, %v5097_v44 }
 0x150   : > { %2089 = vmatpush.msrb.mxu1 %v4960_v7  ;;  %2185 = vmatpush.msrb.mxu3 %v2184_v46  ;;  %v5335_v7 = vand.u32 4294901760, %v370_v3  ;;  %v2202_v46 = vand.u32 4294901760, %v2201_v14  ;;  %v2213_v18 = vsub.f32 %v5289_v36, %v6276_v21  ;;  %v6278_v14 = vand.u32 4294901760, %v5302_v31 }
 0x151   : > { %2046 = vmatpush.msrb.mxu0 %v6275_v42  ;;  %2132 = vmatpush.msrb.mxu2 %v5218_v37  ;;  %v5349_v42 = vand.u32 4294901760, %v369_v47  ;;  %v2230_v20 = vand.u32 4294901760, %v5329_v40 }
 0x152   : > { %2091 = vmatpush.msrb.mxu1 %v4971_v0  ;;  %2191 = vmatpush.msrb.mxu3 %v2190_v17  ;;  %v5351_v0 = vand.u32 4294901760, %v285_v25  ;;  %v2208_v17 = vand.u32 4294901760, %v2207_v23  ;;  %v2219_v21 = vsub.f32 %v5302_v31, %v6278_v14  ;;  %v5362_v41 = vsub.f32 %v370_v3, %v5335_v7 }
 0x153   : > { %2050 = vmatpush.msrb.mxu0 %v6277_v56  ;;  %2134 = vmatpush.msrb.mxu2 %v5234_v61  ;;  %v5364_v56 = vand.u32 4294901760, %v368_v38  ;;  %v2236_v14 = vand.u32 4294901760, %v5343_v58  ;;  %v5375_v3 = vsub.f32 %v369_v47, %v5349_v42 }
 0x154   : > { %2093 = vmatpush.msrb.mxu1 %v4980_v45  ;;  %2197 = vmatpush.msrb.mxu3 %v2196_v50  ;;  %v2214_v45 = vand.u32 4294901760, %v2213_v18  ;;  %v6280_v50 = vand.u32 4294901760, %v5315_v43  ;;  %v6282_v18 = vand.u32 4294901760, %v5109_v52  ;;  %v2242_v44 = vand.u32 4294901760, %v5362_v41 }
 0x155   : > { %2054 = vmatpush.msrb.mxu0 %v6279_v19  ;;  %2136 = vmatpush.msrb.mxu2 %v5248_v51  ;;  %v5378_v19 = vsub.f32 %v285_v25, %v5351_v0  ;;  %v5389_v47 = vsub.f32 %v368_v38, %v5364_v56  ;;  %v2237_v25 = vsub.f32 %v5343_v58, %v2236_v14  ;;  %v2248_v52 = vand.u32 4294901760, %v5375_v3 }
 0x156   : > { %2095 = vmatpush.msrb.mxu1 %v4991_v32  ;;  %2203 = vmatpush.msrb.mxu3 %v2202_v46  ;;  %v2225_v23 = vsub.f32 %v5315_v43, %v6280_v50  ;;  %v2220_v32 = vand.u32 4294901760, %v2219_v21  ;;  %v2231_v46 = vsub.f32 %v5329_v40, %v2230_v20 }
 0x157   : > { %2058 = vmatpush.msrb.mxu0 %v6281_v57  ;;  %2138 = vmatpush.msrb.mxu2 %v5263_v1  ;;  %v2155_v21 = vand.u32 4294901760, %v5378_v19  ;;  %v2238_v50 = vand.u32 4294901760, %v2237_v25 }
 0x158   : > { %2097 = vmatpush.msrb.mxu1 %v5012_v49  ;;  %2209 = vmatpush.msrb.mxu3 %v2208_v17  ;;  %v2226_v49 = vand.u32 4294901760, %v2225_v23  ;;  %v6283_v17 = vand.u32 4294901760, %v5123_v34  ;;  %v2232_v38 = vand.u32 4294901760, %v2231_v46  ;;  %v2243_v34 = vsub.f32 %v5362_v41, %v2242_v44  ;;  %v391_v46 = vld [vmem:[%s3892_s11 + $0x338] sm:$0xff] }
 0x159   : > { %2062 = vmatpush.msrb.mxu0 %v6282_v18  ;;  %2140 = vmatpush.msrb.mxu2 %v5278_v53  ;;  %v6285_v23 = vand.u32 4294901760, %v5155_v55 }
 0x15a   : > { %2099 = vmatpush.msrb.mxu1 %v5026_v8  ;;  %2215 = vmatpush.msrb.mxu3 %v2214_v45  ;;  %v6284_v8 = vand.u32 4294901760, %v5137_v62  ;;  %v2254_v45 = vand.u32 4294901760, %v5389_v47  ;;  %v2156_v62 = vsub.f32 %v5378_v19, %v2155_v21  ;;  %v2244_v55 = vand.u32 4294901760, %v2243_v34 }
 0x15b   : > { %2066 = vmatpush.msrb.mxu0 %v6283_v17  ;;  %2142 = vmatpush.msrb.mxu2 %v5291_v5 }
 0x15c   : > { %2101 = vmatpush.msrb.mxu1 %v5038_v30  ;;  %2221 = vmatpush.msrb.mxu3 %v2220_v32  ;;  %v2249_v30 = vsub.f32 %v5375_v3, %v2248_v52  ;;  %v2255_v57 = vsub.f32 %v5389_v47, %v2254_v45 }
 0x15d   : > { %2070 = vmatpush.msrb.mxu0 %v6284_v8  ;;  %2144 = vmatpush.msrb.mxu2 %v5304_v15 }
 0x15e   : > { %2103 = vmatpush.msrb.mxu1 %v5052_v13  ;;  %2227 = vmatpush.msrb.mxu3 %v2226_v49  ;;  %v6286_v13 = vand.u32 4294901760, %v5179_v35  ;;  %v2250_v32 = vand.u32 4294901760, %v2249_v30  ;;  %v2256_v35 = vand.u32 4294901760, %v2255_v57  ;;  %v390_v49 = vld [vmem:[%s3892_s11 + $0x330] sm:$0xff]  ;;  %v387_v57 = vld [vmem:[%s3892_s11 + $0x318] sm:$0xff] }
 0x15f   : > { %2074 = vmatpush.msrb.mxu0 %v6285_v23  ;;  %2146 = vmatpush.msrb.mxu2 %v5317_v2  ;;  %v388_v23 = vld [vmem:[%s3892_s11 + $0x320] sm:$0xff] }
 0x160   : > { %2105 = vmatpush.msrb.mxu1 %v5065_v27  ;;  %2233 = vmatpush.msrb.mxu3 %v2232_v38  ;;  %v2157_v27 = vand.u32 4294901760, %v2156_v62 }
 0x161   : > { %2078 = vmatpush.msrb.mxu0 %v6286_v13  ;;  %2148 = vmatpush.msrb.mxu2 %v5335_v7 }
 0x162   : > { %2107 = vmatpush.msrb.mxu1 %v5078_v39  ;;  %2239 = vmatpush.msrb.mxu3 %v2238_v50  ;;  %v6287_v39 = vand.u32 4294901760, %v5172_v22 }
 0x163   : > { %2080 = vmatmul.f32.vlgmr.msrb.gmra.mxu0 %v5087_v16  ;;  %2150 = vmatpush.msrb.mxu2 %v5349_v42 }
 0x164   : > { %2265 = vmatpush.msra.mxu0 %v5172_v22  ;;  %2109 = vmatpush.msrb.mxu1 %v5093_v10  ;;  %v6288_v10 = vand.u32 4294901760, %v5194_v60 }
 0x165   : > { %2245 = vmatpush.msrb.mxu3 %v2244_v55  ;;  %2152 = vmatpush.msrb.mxu2 %v5364_v56 }
 0x166   : > { %2268 = vmatpush.msra.mxu0 %v5194_v60  ;;  %2111 = vmatpush.msrb.mxu1 %v5105_v63  ;;  %v6289_v63 = vand.u32 4294901760, %v5205_v28  ;;  %v399_v60 = vld [vmem:[%s3892_s11 + $0x378] sm:$0xff] }
 0x167   : > { %2251 = vmatpush.msrb.mxu3 %v2250_v32  ;;  %2158 = vmatmul.f32.vlgmr.msrb.gmra.mxu2 %v2157_v27  ;;  %v5486_v22 = vand.u32 4294901760, %v399_v60  ;;  %v5620_v27 = vand.u32 4294901760, %v388_v23 }
 0x168   : > { %2271 = vmatpush.msra.mxu0 %v5205_v28  ;;  %2359 = vmatpush.msra.mxu2 %v6287_v39  ;;  %v397_v28 = vld [vmem:[%s3892_s11 + $0x368] sm:$0xff] }
 0x169   : > { %2113 = vmatpush.msrb.mxu1 %v5128_v54  ;;  %2257 = vmatpush.msrb.mxu3 %v2256_v35  ;;  %v6290_v54 = vand.u32 4294901760, %v5213_v26 }
 0x16a   : > { %2259 = vmatmul.f32.vlgmr.msrb.gmra.mxu3 %v5351_v0  ;;  %2274 = vmatpush.msra.mxu0 %v5213_v26  ;;  %v6293_v26 = vand.u32 4294901760, %v5261_v59 }
 0x16b   : > { %2363 = vmatpush.msra.mxu2 %v6288_v10  ;;  %2426 = vmatpush.msra.mxu3 %v5142_v29 }
 0x16c   : > { %2115 = vmatpush.msrb.mxu1 %v5149_v6  ;;  %2277 = vmatpush.msra.mxu0 %v5225_v11  ;;  %v6295_v6 = vand.u32 4294901760, %v5289_v36 }
 0x16d   : > { %2117 = vmatmul.f32.vlgmr.msrb.gmra.mxu1 %v5087_v16  ;;  %2367 = vmatpush.msra.mxu2 %v6289_v63  ;;  %v6291_v16 = vand.u32 4294901760, %v5225_v11  ;;  %v396_v11 = vld [vmem:[%s3892_s11 + $0x360] sm:$0xff]  ;;  %v386_v63 = vld [vmem:[%s3892_s11 + $0x310] sm:$0xff] }
 0x16e   : > { %2318 = vmatpush.msra.mxu1 %v5142_v29  ;;  %2428 = vmatpush.msra.mxu3 %v5163_v4  ;;  %v6292_v29 = vand.u32 4294901760, %v5246_v33 }
 0x16f   : > { %2280 = vmatpush.msra.mxu0 %v5246_v33  ;;  %2371 = vmatpush.msra.mxu2 %v6290_v54  ;;  %v5513_v33 = vand.u32 4294901760, %v396_v11 }
 0x170   : > { %2320 = vmatpush.msra.mxu1 %v5163_v4  ;;  %2430 = vmatpush.msra.mxu3 %v5181_v48  ;;  %v398_v4 = vld [vmem:[%s3892_s11 + $0x370] sm:$0xff] }
 0x171   : > { %2283 = vmatpush.msra.mxu0 %v5261_v59  ;;  %2375 = vmatpush.msra.mxu2 %v6291_v16  ;;  %v394_v59 = vld [vmem:[%s3892_s11 + $0x350] sm:$0xff] }
 0x172   : > { %2322 = vmatpush.msra.mxu1 %v5181_v48  ;;  %2432 = vmatpush.msra.mxu3 %v5187_v12  ;;  %v6294_v48 = vand.u32 4294901760, %v5276_v24 }
 0x173   : > { %2286 = vmatpush.msra.mxu0 %v5276_v24  ;;  %2379 = vmatpush.msra.mxu2 %v6292_v29  ;;  %v5502_v24 = vand.u32 4294901760, %v397_v28  ;;  %v5635_v29 = vand.u32 4294901760, %v387_v57 }
 0x174   : > { %2324 = vmatpush.msra.mxu1 %v5187_v12  ;;  %2434 = vmatpush.msra.mxu3 %v5199_v9  ;;  %v6297_v12 = vand.u32 4294901760, %v5315_v43 }
 0x175   : > { %2289 = vmatpush.msra.mxu0 %v5289_v36  ;;  %2383 = vmatpush.msra.mxu2 %v6293_v26  ;;  %v5528_v36 = vsub.f32 %v397_v28, %v5502_v24  ;;  %v385_v28 = vld [vmem:[%s3892_s11 + $0x308] sm:$0xff] }
 0x176   : > { %2326 = vmatpush.msra.mxu1 %v5199_v9  ;;  %2436 = vmatpush.msra.mxu3 %v5218_v37  ;;  %v6296_v9 = vand.u32 4294901760, %v5302_v31 }
 0x177   : > { %2292 = vmatpush.msra.mxu0 %v5302_v31  ;;  %2387 = vmatpush.msra.mxu2 %v6294_v48  ;;  %v393_v31 = vld [vmem:[%s3892_s11 + $0x348] sm:$0xff] }
 0x178   : > { %2328 = vmatpush.msra.mxu1 %v5218_v37  ;;  %2438 = vmatpush.msra.mxu3 %v5234_v61  ;;  %v5494_v37 = vand.u32 4294901760, %v398_v4 }
 0x179   : > { %2295 = vmatpush.msra.mxu0 %v5315_v43  ;;  %2391 = vmatpush.msra.mxu2 %v6295_v6  ;;  %v5540_v43 = vsub.f32 %v396_v11, %v5513_v33 }
 0x17a   : > { %2330 = vmatpush.msra.mxu1 %v5234_v61  ;;  %2440 = vmatpush.msra.mxu3 %v5248_v51  ;;  %v5505_v61 = vsub.f32 %v399_v60, %v5486_v22 }
 0x17b   : > { %2298 = vmatpush.msra.mxu0 %v5329_v40  ;;  %2395 = vmatpush.msra.mxu2 %v6296_v9  ;;  %v5647_v9 = vand.u32 4294901760, %v386_v63 }
 0x17c   : > { %2332 = vmatpush.msra.mxu1 %v5248_v51  ;;  %2442 = vmatpush.msra.mxu3 %v5263_v1  ;;  %v5516_v51 = vsub.f32 %v398_v4, %v5494_v37 }
 0x17d   : > { %2301 = vmatpush.msra.mxu0 %v5343_v58  ;;  %2399 = vmatpush.msra.mxu2 %v6297_v12  ;;  %v5533_v58 = vand.u32 4294901760, %v394_v59  ;;  %v5651_v12 = vsub.f32 %v388_v23, %v5620_v27 }
 0x17e   : > { %2334 = vmatpush.msra.mxu1 %v5263_v1  ;;  %2444 = vmatpush.msra.mxu3 %v5278_v53  ;;  %v395_v1 = vld [vmem:[%s3892_s11 + $0x358] sm:$0xff] }
 0x17f   : > { %2304 = vmatpush.msra.mxu0 %v5362_v41  ;;  %2403 = vmatpush.msra.mxu2 %v2230_v20  ;;  %v392_v20 = vld [vmem:[%s3892_s11 + $0x340] sm:$0xff]  ;;  %v5554_v41 = vand.u32 4294901760, %v393_v31 }
 0x180   : > { %2336 = vmatpush.msra.mxu1 %v5278_v53  ;;  %2446 = vmatpush.msra.mxu3 %v5291_v5  ;;  %v5522_v53 = vand.u32 4294901760, %v395_v1  ;;  %v5568_v18 = vand.u32 4294901760, %v392_v20 }
 0x181   : > { %2307 = vmatpush.msra.mxu0 %v5375_v3  ;;  %2407 = vmatpush.msra.mxu2 %v2236_v14  ;;  %v2517_v14 = vand.u32 4294901760, %v5528_v36  ;;  %v5560_v3 = vsub.f32 %v394_v59, %v5533_v58  ;;  %v5583_v38 = vsub.f32 %v393_v31, %v5554_v41 }
 0x182   : > { %2338 = vmatpush.msra.mxu1 %v5291_v5  ;;  %2448 = vmatpush.msra.mxu3 %v5304_v15  ;;  %v2505_v5 = vand.u32 4294901760, %v5505_v61  ;;  %v5546_v40 = vsub.f32 %v395_v1, %v5522_v53  ;;  %v5597_v50 = vsub.f32 %v392_v20, %v5568_v18  ;;  %v5665_v20 = vsub.f32 %v387_v57, %v5635_v29 }
 0x183   : > { %2310 = vmatpush.msra.mxu0 %v5389_v47  ;;  %2411 = vmatpush.msra.mxu2 %v2242_v44  ;;  %v6179_v44 = vand.u32 4294901760, %v5540_v43  ;;  %v2518_v17 = vsub.f32 %v5528_v36, %v2517_v14  ;;  %v6174_v13 = vand.u32 4294901760, %v5583_v38 }
 0x184   : > { %2340 = vmatpush.msra.mxu1 %v5304_v15  ;;  %2450 = vmatpush.msra.mxu3 %v5317_v2  ;;  %v2511_v15 = vand.u32 4294901760, %v5516_v51  ;;  %v6177_v47 = vand.u32 4294901760, %v5546_v40  ;;  %v6172_v35 = vand.u32 4294901760, %v5597_v50 }
 0x185   : > { %2313 = vmatmul.f32.vlgmr.msra.gmra.mxu0 %v5378_v19  ;;  %2415 = vmatpush.msra.mxu2 %v2248_v52  ;;  %v5580_v52 = vand.u32 4294901760, %v391_v46  ;;  %v2524_v34 = vsub.f32 %v5540_v43, %v6179_v44  ;;  %v2519_v30 = vand.u32 4294901760, %v2518_v17  ;;  %v286_v19 = vld [vmem:[#allocation2 + $0x30] sm:$0xff]  ;;  %v2542_v16 = vsub.f32 %v5583_v38, %v6174_v13  ;;  %v407_v44 = vld [vmem:[%s3892_s11 + $0x3b8] sm:$0xff] }
 0x186   : > { %2463 = vmatpush.msrb.mxu0 %v5486_v22  ;;  %2342 = vmatpush.msra.mxu1 %v5317_v2  ;;  %v2506_v2 = vsub.f32 %v5505_v61, %v2505_v5  ;;  %v5629_v54 = vand.u32 4294901760, %v286_v19  ;;  %v2548_v60 = vsub.f32 %v5597_v50, %v6172_v35  ;;  %v6167_v17 = vand.u32 4294901760, %v5651_v12 }
 0x187   : > { %2452 = vmatpush.msra.mxu3 %v5335_v7  ;;  %2419 = vmatpush.msra.mxu2 %v2254_v45  ;;  %v5594_v45 = vand.u32 4294901760, %v390_v49  ;;  %v5611_v55 = vsub.f32 %v391_v46, %v5580_v52  ;;  %v2525_v32 = vand.u32 4294901760, %v2524_v34  ;;  %v2543_v1 = vand.u32 4294901760, %v2542_v16 }
 0x188   : > { %2465 = vmatpush.msrb.mxu0 %v5494_v37  ;;  %2344 = vmatpush.msra.mxu1 %v5335_v7  ;;  %v2512_v7 = vsub.f32 %v5516_v51, %v2511_v15  ;;  %v2507_v25 = vand.u32 4294901760, %v2506_v2  ;;  %v5657_v11 = vsub.f32 %v286_v19, %v5629_v54  ;;  %v415_v2 = vld [vmem:[%s3892_s11 + $0x3f8] sm:$0xff]  ;;  %v5670_v46 = vand.u32 4294901760, %v385_v28 }
 0x189   : > { %2454 = vmatpush.msra.mxu3 %v5349_v42  ;;  %2421 = vmatmul.f32.vlgmr.msra.gmra.mxu2 %v5351_v0  ;;  %v5624_v39 = vsub.f32 %v390_v49, %v5594_v45  ;;  %v6171_v26 = vand.u32 4294901760, %v5611_v55  ;;  %v2549_v49 = vand.u32 4294901760, %v2548_v60  ;;  %v5684_v34 = vand.u32 4294901760, %v415_v2  ;;  %v412_v60 = vld [vmem:[%s3892_s11 + $0x3e0] sm:$0xff] }
 0x18a   : > { %2467 = vmatpush.msrb.mxu0 %v5502_v24  ;;  %2606 = vmatpush.msrb.mxu2 %v5505_v61  ;;  %v2513_v8 = vand.u32 4294901760, %v2512_v7  ;;  %v384_v7 = vld [vmem:[%s3892_s11 + $0x300] sm:$0xff]  ;;  %v5697_v57 = vsub.f32 %v385_v28, %v5670_v46 }
 0x18b   : > { %2346 = vmatpush.msra.mxu1 %v5349_v42  ;;  %2456 = vmatpush.msra.mxu3 %v5364_v56  ;;  %v6175_v42 = vand.u32 4294901760, %v5560_v3  ;;  %v6170_v4 = vand.u32 4294901760, %v5624_v39  ;;  %v2554_v59 = vsub.f32 %v5611_v55, %v6171_v26  ;;  %v5691_v19 = vand.u32 4294901760, %v384_v7 }
 0x18c   : > { %2458 = vmatmul.f32.vlgmr.msra.gmra.mxu3 %v5351_v0  ;;  %2469 = vmatpush.msrb.mxu0 %v5513_v33  ;;  %v389_v0 = vld [vmem:[%s3892_s11 + $0x328] sm:$0xff] }
 0x18d   : > { %2609 = vmatpush.msrb.mxu2 %v5516_v51  ;;  %2659 = vmatpush.msrb.mxu3 %v5486_v22  ;;  %v5607_v62 = vand.u32 4294901760, %v389_v0  ;;  %v2555_v23 = vand.u32 4294901760, %v2554_v59  ;;  %v406_v51 = vld [vmem:[%s3892_s11 + $0x3b0] sm:$0xff] }
 0x18e   : > { %2348 = vmatpush.msra.mxu1 %v5364_v56  ;;  %2471 = vmatpush.msrb.mxu0 %v5522_v53  ;;  %v2530_v56 = vsub.f32 %v5546_v40, %v6177_v47  ;;  %v408_v47 = vld [vmem:[%s3892_s11 + $0x3c0] sm:$0xff] }
 0x18f   : > { %2352 = vmatmul.f32.vlgmr.msra.gmra.mxu1 %v2155_v21  ;;  %2612 = vmatpush.msrb.mxu2 %v5528_v36  ;;  %v2536_v21 = vsub.f32 %v5560_v3, %v6175_v42  ;;  %v5639_v48 = vsub.f32 %v389_v0, %v5607_v62  ;;  %v5679_v0 = vsub.f32 %v386_v63, %v5647_v9 }
 0x190   : > { %2508 = vmatpush.msrb.mxu1 %v2507_v25  ;;  %2661 = vmatpush.msrb.mxu3 %v5494_v37  ;;  %v2531_v10 = vand.u32 4294901760, %v2530_v56  ;;  %v2560_v25 = vsub.f32 %v5624_v39, %v6170_v4  ;;  %v414_v56 = vld [vmem:[%s3892_s11 + $0x3f0] sm:$0xff]  ;;  %v2572_v63 = vsub.f32 %v5651_v12, %v6167_v17 }
 0x191   : > { %2473 = vmatpush.msrb.mxu0 %v5533_v58  ;;  %2615 = vmatpush.msrb.mxu2 %v5540_v43  ;;  %v2537_v6 = vand.u32 4294901760, %v2536_v21  ;;  %v6168_v31 = vand.u32 4294901760, %v5639_v48  ;;  %v6169_v21 = vand.u32 4294901760, %v5665_v20  ;;  %v6173_v16 = vand.u32 4294901760, %v5679_v0 }
 0x192   : > { %2514 = vmatpush.msrb.mxu1 %v2513_v8  ;;  %2663 = vmatpush.msrb.mxu3 %v5502_v24  ;;  %v2496_v8 = vand.u32 4294901760, %v5657_v11 }
 0x193   : > { %2475 = vmatpush.msrb.mxu0 %v5554_v41  ;;  %2618 = vmatpush.msrb.mxu2 %v5546_v40 }
 0x194   : > { %2520 = vmatpush.msrb.mxu1 %v2519_v30  ;;  %2665 = vmatpush.msrb.mxu3 %v5513_v33  ;;  %v2566_v30 = vsub.f32 %v5639_v48, %v6168_v31  ;;  %v2497_v28 = vsub.f32 %v5657_v11, %v2496_v8  ;;  %v411_v31 = vld [vmem:[%s3892_s11 + $0x3d8] sm:$0xff] }
 0x195   : > { %2477 = vmatpush.msrb.mxu0 %v5568_v18  ;;  %2621 = vmatpush.msrb.mxu2 %v5560_v3  ;;  %v5741_v35 = vand.u32 4294901760, %v411_v31 }
 0x196   : > { %2526 = vmatpush.msrb.mxu1 %v2525_v32  ;;  %2667 = vmatpush.msrb.mxu3 %v5522_v53  ;;  %v413_v32 = vld [vmem:[%s3892_s11 + $0x3e8] sm:$0xff]  ;;  %v2567_v59 = vand.u32 4294901760, %v2566_v30  ;;  %v2573_v30 = vand.u32 4294901760, %v2572_v63  ;;  %v2498_v4 = vand.u32 4294901760, %v2497_v28 }
 0x197   : > { %2479 = vmatpush.msrb.mxu0 %v5580_v52  ;;  %2624 = vmatpush.msrb.mxu2 %v5583_v38  ;;  %v5723_v17 = vand.u32 4294901760, %v413_v32 }
 0x198   : > { %2532 = vmatpush.msrb.mxu1 %v2531_v10  ;;  %2669 = vmatpush.msrb.mxu3 %v5533_v58  ;;  %v2561_v10 = vand.u32 4294901760, %v2560_v25  ;;  %v5721_v25 = vsub.f32 %v384_v7, %v5691_v19  ;;  %v2584_v7 = vsub.f32 %v5679_v0, %v6173_v16 }
 0x199   : > { %2481 = vmatpush.msrb.mxu0 %v5594_v45  ;;  %2627 = vmatpush.msrb.mxu2 %v5597_v50 }
 0x19a   : > { %2538 = vmatpush.msrb.mxu1 %v2537_v6  ;;  %2671 = vmatpush.msrb.mxu3 %v5554_v41  ;;  %v5705_v6 = vand.u32 4294901760, %v414_v56  ;;  %v6180_v16 = vand.u32 4294901760, %v5721_v25 }
 0x19b   : > { %2483 = vmatpush.msrb.mxu0 %v5607_v62  ;;  %2630 = vmatpush.msrb.mxu2 %v5611_v55 }
 0x19c   : > { %2544 = vmatpush.msrb.mxu1 %v2543_v1  ;;  %2673 = vmatpush.msrb.mxu3 %v5568_v18  ;;  %v5714_v1 = vsub.f32 %v415_v2, %v5684_v34  ;;  %v6176_v2 = vand.u32 4294901760, %v5697_v57 }
 0x19d   : > { %2485 = vmatpush.msrb.mxu0 %v5620_v27  ;;  %2633 = vmatpush.msrb.mxu2 %v5624_v39 }
 0x19e   : > { %2550 = vmatpush.msrb.mxu1 %v2549_v49  ;;  %2675 = vmatpush.msrb.mxu3 %v5580_v52  ;;  %v2578_v49 = vsub.f32 %v5665_v20, %v6169_v21  ;;  %v5736_v21 = vsub.f32 %v414_v56, %v5705_v6  ;;  %v6178_v26 = vand.u32 4294901760, %v5714_v1  ;;  %v5747_v56 = vsub.f32 %v413_v32, %v5723_v17 }
 0x19f   : > { %2487 = vmatpush.msrb.mxu0 %v5635_v29  ;;  %2636 = vmatpush.msrb.mxu2 %v5639_v48  ;;  %v2590_v28 = vsub.f32 %v5697_v57, %v6176_v2 }
 0x1a0   : > { %2556 = vmatpush.msrb.mxu1 %v2555_v23  ;;  %2677 = vmatpush.msrb.mxu3 %v5594_v45  ;;  %v5729_v23 = vand.u32 4294901760, %v412_v60  ;;  %v2579_v63 = vand.u32 4294901760, %v2578_v49  ;;  %v2585_v49 = vand.u32 4294901760, %v2584_v7  ;;  %v6181_v42 = vand.u32 4294901760, %v5736_v21 }
 0x1a1   : > { %2489 = vmatpush.msrb.mxu0 %v5647_v9  ;;  %2639 = vmatpush.msrb.mxu2 %v5651_v12  ;;  %v2847_v2 = vsub.f32 %v5714_v1, %v6178_v26 }
 0x1a2   : > { %2562 = vmatpush.msrb.mxu1 %v2561_v10  ;;  %2679 = vmatpush.msrb.mxu3 %v5607_v62  ;;  %v410_v10 = vld [vmem:[%s3892_s11 + $0x3d0] sm:$0xff]  ;;  %v5755_v13 = vsub.f32 %v412_v60, %v5729_v23  ;;  %v5767_v60 = vsub.f32 %v411_v31, %v5741_v35  ;;  %v2591_v31 = vand.u32 4294901760, %v2590_v28  ;;  %v2853_v61 = vsub.f32 %v5736_v21, %v6181_v42 }
 0x1a3   : > { %2491 = vmatpush.msrb.mxu0 %v5670_v46  ;;  %2642 = vmatpush.msrb.mxu2 %v5665_v20  ;;  %v5760_v32 = vand.u32 4294901760, %v410_v10  ;;  %v2848_v28 = vand.u32 4294901760, %v2847_v2  ;;  %v5805_v42 = vand.u32 4294901760, %v407_v44  ;;  %v6298_v2 = vand.u32 4294901760, %v5540_v43 }
 0x1a4   : > { %2568 = vmatpush.msrb.mxu1 %v2567_v59  ;;  %2681 = vmatpush.msrb.mxu3 %v5620_v27  ;;  %v409_v59 = vld [vmem:[%s3892_s11 + $0x3c8] sm:$0xff]  ;;  %v6183_v26 = vand.u32 4294901760, %v5755_v13  ;;  %v6299_v43 = vand.u32 4294901760, %v5546_v40 }
 0x1a5   : > { %2493 = vmatpush.msrb.mxu0 %v5691_v19  ;;  %2645 = vmatpush.msrb.mxu2 %v5679_v0  ;;  %v5776_v7 = vand.u32 4294901760, %v409_v59 }
 0x1a6   : > { %2574 = vmatpush.msrb.mxu1 %v2573_v30  ;;  %2683 = vmatpush.msrb.mxu3 %v5635_v29  ;;  %v2596_v30 = vsub.f32 %v5721_v25, %v6180_v16  ;;  %v6184_v16 = vand.u32 4294901760, %v5767_v60  ;;  %v2865_v36 = vsub.f32 %v5755_v13, %v6183_v26 }
 0x1a7   : > { %2499 = vmatmul.f32.vlgmr.msrb.gmra.mxu0 %v2498_v4  ;;  %2648 = vmatpush.msrb.mxu2 %v5697_v57  ;;  %v6182_v4 = vand.u32 4294901760, %v5747_v56 }
 0x1a8   : > { %2700 = vmatpush.msra.mxu0 %v2505_v5  ;;  %2580 = vmatpush.msrb.mxu1 %v2579_v63  ;;  %v5788_v5 = vsub.f32 %v410_v10, %v5760_v32  ;;  %v5790_v63 = vand.u32 4294901760, %v408_v47 }
 0x1a9   : > { %2685 = vmatpush.msrb.mxu3 %v5647_v9  ;;  %2651 = vmatpush.msrb.mxu2 %v5721_v25  ;;  %v2859_v10 = vsub.f32 %v5747_v56, %v6182_v4 }
 0x1aa   : > { %2704 = vmatpush.msra.mxu0 %v2511_v15  ;;  %2586 = vmatpush.msrb.mxu1 %v2585_v49  ;;  %v2597_v15 = vand.u32 4294901760, %v2596_v30  ;;  %v5803_v49 = vsub.f32 %v409_v59, %v5776_v7  ;;  %v2854_v30 = vand.u32 4294901760, %v2853_v61  ;;  %v5818_v4 = vsub.f32 %v408_v47, %v5790_v63  ;;  %v403_v59 = vld [vmem:[%s3892_s11 + $0x398] sm:$0xff] }
 0x1ab   : > { %2687 = vmatpush.msrb.mxu3 %v5670_v46  ;;  %2654 = vmatmul.f32.vlgmr.msrb.gmra.mxu2 %v5657_v11  ;;  %v2871_v11 = vsub.f32 %v5767_v60, %v6184_v16  ;;  %v2860_v61 = vand.u32 4294901760, %v2859_v10  ;;  %v5831_v47 = vsub.f32 %v407_v44, %v5805_v42  ;;  %v6300_v40 = vand.u32 4294901760, %v5788_v5 }
 0x1ac   : > { %2708 = vmatpush.msra.mxu0 %v2517_v14  ;;  %2804 = vmatpush.msra.mxu2 %v5684_v34  ;;  %v405_v14 = vld [vmem:[%s3892_s11 + $0x3a8] sm:$0xff]  ;;  %v6186_v10 = vand.u32 4294901760, %v5818_v4  ;;  %v6301_v16 = vand.u32 4294901760, %v5560_v3  ;;  %v402_v3 = vld [vmem:[%s3892_s11 + $0x390] sm:$0xff] }
 0x1ad   : > { %2592 = vmatpush.msrb.mxu1 %v2591_v31  ;;  %2689 = vmatpush.msrb.mxu3 %v5691_v19  ;;  %v5820_v31 = vand.u32 4294901760, %v406_v51  ;;  %v5833_v26 = vand.u32 4294901760, %v405_v14 }
 0x1ae   : > { %2693 = vmatmul.f32.vlgmr.msrb.gmra.mxu3 %v2496_v8  ;;  %2712 = vmatpush.msra.mxu0 %v6298_v2  ;;  %v404_v8 = vld [vmem:[%s3892_s11 + $0x3a0] sm:$0xff]  ;;  %v6185_v2 = vand.u32 4294901760, %v5803_v49 }
 0x1af   : > { %2806 = vmatpush.msra.mxu2 %v5705_v6  ;;  %2849 = vmatpush.msra.mxu3 %v2848_v28  ;;  %v2866_v28 = vand.u32 4294901760, %v2865_v36  ;;  %v5844_v44 = vsub.f32 %v406_v51, %v5820_v31  ;;  %v2872_v36 = vand.u32 4294901760, %v2871_v11  ;;  %v5857_v51 = vsub.f32 %v405_v14, %v5833_v26  ;;  %v400_v14 = vld [vmem:[%s3892_s11 + $0x380] sm:$0xff] }
 0x1b0   : > { %2598 = vmatpush.msrb.mxu1 %v2597_v15  ;;  %2716 = vmatpush.msra.mxu0 %v6299_v43  ;;  %v2877_v15 = vsub.f32 %v5788_v5, %v6300_v40  ;;  %v5846_v43 = vand.u32 4294901760, %v404_v8  ;;  %v5859_v40 = vand.u32 4294901760, %v403_v59  ;;  %v2889_v11 = vsub.f32 %v5818_v4, %v6186_v10 }
 0x1b1   : > { %2600 = vmatmul.f32.vlgmr.msrb.gmra.mxu1 %v5629_v54  ;;  %2808 = vmatpush.msra.mxu2 %v5723_v17 }
 0x1b2   : > { %2767 = vmatpush.msra.mxu1 %v5486_v22  ;;  %2855 = vmatpush.msra.mxu3 %v2854_v30  ;;  %v2883_v22 = vsub.f32 %v5803_v49, %v6185_v2  ;;  %v401_v2 = vld [vmem:[%s3892_s11 + $0x388] sm:$0xff]  ;;  %v287_v30 = vld [vmem:[#allocation2 + $0x38] sm:$0xff]  ;;  %v5885_v10 = vsub.f32 %v403_v59, %v5859_v40 }
 0x1b3   : > { %2720 = vmatpush.msra.mxu0 %v6301_v16  ;;  %2810 = vmatpush.msra.mxu2 %v5729_v23  ;;  %v6302_v16 = vand.u32 4294901760, %v5583_v38  ;;  %v6303_v38 = vand.u32 4294901760, %v5597_v50  ;;  %v6305_v50 = vand.u32 4294901760, %v5611_v55 }
 0x1b4   : > { %2769 = vmatpush.msra.mxu1 %v5494_v37  ;;  %2861 = vmatpush.msra.mxu3 %v2860_v61  ;;  %v2878_v37 = vand.u32 4294901760, %v2877_v15  ;;  %v5871_v61 = vsub.f32 %v404_v8, %v5846_v43  ;;  %v6304_v15 = vand.u32 4294901760, %v5831_v47  ;;  %v6307_v8 = vand.u32 4294901760, %v5624_v39 }
 0x1b5   : > { %2724 = vmatpush.msra.mxu0 %v6302_v16  ;;  %2812 = vmatpush.msra.mxu2 %v5741_v35  ;;  %v6309_v39 = vand.u32 4294901760, %v5639_v48 }
 0x1b6   : > { %2771 = vmatpush.msra.mxu1 %v5502_v24  ;;  %2867 = vmatpush.msra.mxu3 %v2866_v28  ;;  %v5877_v24 = vand.u32 4294901760, %v402_v3  ;;  %v2884_v28 = vand.u32 4294901760, %v2883_v22  ;;  %v2895_v16 = vsub.f32 %v5831_v47, %v6304_v15  ;;  %v6306_v22 = vand.u32 4294901760, %v5844_v44 }
 0x1b7   : > { %2728 = vmatpush.msra.mxu0 %v6303_v38  ;;  %2814 = vmatpush.msra.mxu2 %v5760_v32  ;;  %v5891_v38 = vand.u32 4294901760, %v401_v2  ;;  %v2912_v59 = vand.u32 4294901760, %v5871_v61 }
 0x1b8   : > { %2773 = vmatpush.msra.mxu1 %v5513_v33  ;;  %2873 = vmatpush.msra.mxu3 %v2872_v36  ;;  %v5893_v33 = vand.u32 4294901760, %v287_v30  ;;  %v2890_v36 = vand.u32 4294901760, %v2889_v11  ;;  %v2901_v15 = vsub.f32 %v5844_v44, %v6306_v22  ;;  %v5904_v55 = vsub.f32 %v402_v3, %v5877_v24 }
 0x1b9   : > { %2732 = vmatpush.msra.mxu0 %v6305_v50  ;;  %2816 = vmatpush.msra.mxu2 %v5776_v7  ;;  %v5906_v50 = vand.u32 4294901760, %v400_v14  ;;  %v2918_v22 = vand.u32 4294901760, %v5885_v10  ;;  %v5917_v3 = vsub.f32 %v401_v2, %v5891_v38 }
 0x1ba   : > { %2775 = vmatpush.msra.mxu1 %v5522_v53  ;;  %2879 = vmatpush.msra.mxu3 %v2878_v37  ;;  %v2896_v53 = vand.u32 4294901760, %v2895_v16  ;;  %v6308_v37 = vand.u32 4294901760, %v5857_v51  ;;  %v6310_v16 = vand.u32 4294901760, %v5651_v12  ;;  %v2924_v48 = vand.u32 4294901760, %v5904_v55 }
 0x1bb   : > { %2736 = vmatpush.msra.mxu0 %v6307_v8  ;;  %2818 = vmatpush.msra.mxu2 %v5790_v63  ;;  %v5920_v8 = vsub.f32 %v287_v30, %v5893_v33  ;;  %v5931_v2 = vsub.f32 %v400_v14, %v5906_v50  ;;  %v2919_v30 = vsub.f32 %v5885_v10, %v2918_v22  ;;  %v2930_v12 = vand.u32 4294901760, %v5917_v3 }
 0x1bc   : > { %2777 = vmatpush.msra.mxu1 %v5533_v58  ;;  %2885 = vmatpush.msra.mxu3 %v2884_v28  ;;  %v2907_v11 = vsub.f32 %v5857_v51, %v6308_v37  ;;  %v2902_v58 = vand.u32 4294901760, %v2901_v15  ;;  %v2913_v28 = vsub.f32 %v5871_v61, %v2912_v59 }
 0x1bd   : > { %2740 = vmatpush.msra.mxu0 %v6309_v39  ;;  %2820 = vmatpush.msra.mxu2 %v5805_v42  ;;  %v2837_v15 = vand.u32 4294901760, %v5920_v8  ;;  %v2920_v37 = vand.u32 4294901760, %v2919_v30 }
 0x1be   : > { %2779 = vmatpush.msra.mxu1 %v5554_v41  ;;  %2891 = vmatpush.msra.mxu3 %v2890_v36  ;;  %v2908_v41 = vand.u32 4294901760, %v2907_v11  ;;  %v6311_v36 = vand.u32 4294901760, %v5665_v20  ;;  %v2914_v14 = vand.u32 4294901760, %v2913_v28  ;;  %v2925_v20 = vsub.f32 %v5904_v55, %v2924_v48 }
 0x1bf   : > { %2744 = vmatpush.msra.mxu0 %v6310_v16  ;;  %2822 = vmatpush.msra.mxu2 %v5820_v31  ;;  %v6313_v11 = vand.u32 4294901760, %v5697_v57 }
 0x1c0   : > { %2781 = vmatpush.msra.mxu1 %v5568_v18  ;;  %2897 = vmatpush.msra.mxu3 %v2896_v53  ;;  %v6312_v18 = vand.u32 4294901760, %v5679_v0  ;;  %v2936_v53 = vand.u32 4294901760, %v5931_v2  ;;  %v2838_v0 = vsub.f32 %v5920_v8, %v2837_v15  ;;  %v2926_v57 = vand.u32 4294901760, %v2925_v20 }
 0x1c1   : > { %2748 = vmatpush.msra.mxu0 %v6311_v36  ;;  %2824 = vmatpush.msra.mxu2 %v5833_v26 }
 0x1c2   : > { %2783 = vmatpush.msra.mxu1 %v5580_v52  ;;  %2903 = vmatpush.msra.mxu3 %v2902_v58  ;;  %v2931_v52 = vsub.f32 %v5917_v3, %v2930_v12  ;;  %v2937_v39 = vsub.f32 %v5931_v2, %v2936_v53 }
 0x1c3   : > { %2752 = vmatpush.msra.mxu0 %v6312_v18  ;;  %2826 = vmatpush.msra.mxu2 %v5846_v43 }
 0x1c4   : > { %2785 = vmatpush.msra.mxu1 %v5594_v45  ;;  %2909 = vmatpush.msra.mxu3 %v2908_v41  ;;  %v6314_v45 = vand.u32 4294901760, %v5721_v25  ;;  %v2932_v58 = vand.u32 4294901760, %v2931_v52  ;;  %v2938_v25 = vand.u32 4294901760, %v2937_v39 }
 0x1c5   : > { %2756 = vmatpush.msra.mxu0 %v6313_v11  ;;  %2828 = vmatpush.msra.mxu2 %v5859_v40 }
 0x1c6   : > { %2787 = vmatpush.msra.mxu1 %v5607_v62  ;;  %2915 = vmatpush.msra.mxu3 %v2914_v14  ;;  %v2839_v62 = vand.u32 4294901760, %v2838_v0 }
 0x1c7   : > { %2760 = vmatpush.msra.mxu0 %v6314_v45  ;;  %2830 = vmatpush.msra.mxu2 %v5877_v24 }
 0x1c8   : > { %2789 = vmatpush.msra.mxu1 %v5620_v27  ;;  %2921 = vmatpush.msra.mxu3 %v2920_v37  ;;  %v6315_v27 = vand.u32 4294901760, %v5714_v1 }
 0x1c9   : > { %2762 = vmatmul.f32.vlgmr.msra.gmra.mxu0 %v5629_v54  ;;  %2832 = vmatpush.msra.mxu2 %v5891_v38 }
 0x1ca   : > { %2947 = vmatpush.msrb.mxu0 %v5714_v1  ;;  %2791 = vmatpush.msra.mxu1 %v5635_v29  ;;  %v6316_v29 = vand.u32 4294901760, %v5736_v21  ;;  %v454_v1 = vpop.f32.mrf.mxu0 }
 0x1cb   : > { %2927 = vmatpush.msra.mxu3 %v2926_v57  ;;  %2834 = vmatpush.msra.mxu2 %v5906_v50 }
 0x1cc   : > { %2950 = vmatpush.msrb.mxu0 %v5736_v21  ;;  %2793 = vmatpush.msra.mxu1 %v5647_v9  ;;  %v6317_v9 = vand.u32 4294901760, %v5747_v56  ;;  %v6325_v21 = vand.u32 4294901760, %v5857_v51 }
 0x1cd   : > { %2933 = vmatpush.msra.mxu3 %v2932_v58  ;;  %2840 = vmatmul.f32.vlgmr.msra.gmra.mxu2 %v2839_v62 }
 0x1ce   : > { %2953 = vmatpush.msrb.mxu0 %v5747_v56  ;;  %3041 = vmatpush.msrb.mxu2 %v6315_v27  ;;  %v648_v56 = vpop.f32.mrf.mxu3 }
 0x1cf   : > { %2795 = vmatpush.msra.mxu1 %v5670_v46  ;;  %2939 = vmatpush.msra.mxu3 %v2938_v25  ;;  %v6318_v46 = vand.u32 4294901760, %v5755_v13 }
 0x1d0   : > { %2941 = vmatmul.f32.vlgmr.msra.gmra.mxu3 %v5893_v33  ;;  %2956 = vmatpush.msrb.mxu0 %v5755_v13  ;;  %v6321_v13 = vand.u32 4294901760, %v5803_v49 }
 0x1d1   : > { %3045 = vmatpush.msrb.mxu2 %v6316_v29  ;;  %3108 = vmatpush.msrb.mxu3 %v5684_v34 }
 0x1d2   : > { %2797 = vmatpush.msra.mxu1 %v5691_v19  ;;  %2959 = vmatpush.msrb.mxu0 %v5767_v60  ;;  %v6323_v19 = vand.u32 4294901760, %v5831_v47 }
 0x1d3   : > { %2799 = vmatmul.f32.vlgmr.msra.gmra.mxu1 %v5629_v54  ;;  %3049 = vmatpush.msrb.mxu2 %v6317_v9  ;;  %v6319_v54 = vand.u32 4294901760, %v5767_v60  ;;  %v717_v60 = vpop.f32.mrf.mxu0 }
 0x1d4   : > { %3000 = vmatpush.msrb.mxu1 %v5684_v34  ;;  %3110 = vmatpush.msrb.mxu3 %v5705_v6  ;;  %v6320_v34 = vand.u32 4294901760, %v5788_v5 }
 0x1d5   : > { %2962 = vmatpush.msrb.mxu0 %v5788_v5  ;;  %3053 = vmatpush.msrb.mxu2 %v6318_v46 }
 0x1d6   : > { %3002 = vmatpush.msrb.mxu1 %v5705_v6  ;;  %3112 = vmatpush.msrb.mxu3 %v5723_v17  ;;  %v555_v6 = vpop.f32.mrf.mxu1 }
 0x1d7   : > { %2965 = vmatpush.msrb.mxu0 %v5803_v49  ;;  %3057 = vmatpush.msrb.mxu2 %v6319_v54 }
 0x1d8   : > { %3004 = vmatpush.msrb.mxu1 %v5723_v17  ;;  %3114 = vmatpush.msrb.mxu3 %v5729_v23  ;;  %v6322_v17 = vand.u32 4294901760, %v5818_v4 }
 0x1d9   : > { %2968 = vmatpush.msrb.mxu0 %v5818_v4  ;;  %3061 = vmatpush.msrb.mxu2 %v6320_v34 }
 0x1da   : > { %3006 = vmatpush.msrb.mxu1 %v5729_v23  ;;  %3116 = vmatpush.msrb.mxu3 %v5741_v35  ;;  %v609_v23 = vpop.f32.mrf.mxu2 }
 0x1db   : > { %2971 = vmatpush.msrb.mxu0 %v5831_v47  ;;  %3065 = vmatpush.msrb.mxu2 %v6321_v13  ;;  %v950_v47 = vpop.f32.mrf.mxu0 }
 0x1dc   : > { %3008 = vmatpush.msrb.mxu1 %v5741_v35  ;;  %3118 = vmatpush.msrb.mxu3 %v5760_v32  ;;  %v6324_v35 = vand.u32 4294901760, %v5844_v44 }
 0x1dd   : > { %2974 = vmatpush.msrb.mxu0 %v5844_v44  ;;  %3069 = vmatpush.msrb.mxu2 %v6322_v17 }
 0x1de   : > { %3010 = vmatpush.msrb.mxu1 %v5760_v32  ;;  %3120 = vmatpush.msrb.mxu3 %v5776_v7 }
 0x1df   : > { %2977 = vmatpush.msrb.mxu0 %v5857_v51  ;;  %3073 = vmatpush.msrb.mxu2 %v6323_v19 }
 0x1e0   : > { %3012 = vmatpush.msrb.mxu1 %v5776_v7  ;;  %3122 = vmatpush.msrb.mxu3 %v5790_v63  ;;  %v754_v7 = vpop.f32.mrf.mxu1 }
 0x1e1   : > { %2980 = vmatpush.msrb.mxu0 %v5871_v61  ;;  %3077 = vmatpush.msrb.mxu2 %v6324_v35 }
 0x1e2   : > { %3014 = vmatpush.msrb.mxu1 %v5790_v63  ;;  %3124 = vmatpush.msrb.mxu3 %v5805_v42  ;;  %v795_v63 = vpop.f32.mrf.mxu2 }
 0x1e3   : > { %2983 = vmatpush.msrb.mxu0 %v5885_v10  ;;  %3081 = vmatpush.msrb.mxu2 %v6325_v21 }
 0x1e4   : > { %3016 = vmatpush.msrb.mxu1 %v5805_v42  ;;  %3126 = vmatpush.msrb.mxu3 %v5820_v31  ;;  %v556_v42 = vadd.f32 %v555_v6, %v454_v1 }
 0x1e5   : > { %2986 = vmatpush.msrb.mxu0 %v5904_v55  ;;  %3085 = vmatpush.msrb.mxu2 %v2912_v59 }
 0x1e6   : > { %3018 = vmatpush.msrb.mxu1 %v5820_v31  ;;  %3128 = vmatpush.msrb.mxu3 %v5833_v26  ;;  %v896_v31 = vpop.f32.mrf.mxu3 }
 0x1e7   : > { %2989 = vmatpush.msrb.mxu0 %v5917_v3  ;;  %3089 = vmatpush.msrb.mxu2 %v2918_v22 }
 0x1e8   : > { %3020 = vmatpush.msrb.mxu1 %v5833_v26  ;;  %3130 = vmatpush.msrb.mxu3 %v5846_v43  ;;  %v610_v26 = vadd.f32 %v609_v23, %v556_v42  ;;  %v989_v44 = vpop.f32.mrf.mxu1 }
 0x1e9   : > { %2992 = vmatpush.msrb.mxu0 %v5931_v2  ;;  %3093 = vmatpush.msrb.mxu2 %v2924_v48 }
 0x1ea   : > { %3022 = vmatpush.msrb.mxu1 %v5846_v43  ;;  %3132 = vmatpush.msrb.mxu3 %v5859_v40  ;;  %v649_v32 = vadd.f32 %v648_v56, %v610_v26 }
 0x1eb   : > { %2995 = vmatmul.f32.vlgmr.msrb.gmra.mxu0 %v5920_v8  ;;  %3097 = vmatpush.msrb.mxu2 %v2930_v12 }
 0x1ec   : > { %3024 = vmatpush.msrb.mxu1 %v5859_v40  ;;  %3134 = vmatpush.msrb.mxu3 %v5877_v24  ;;  %v718_v4 = vadd.f32 %v717_v60, %v649_v32  ;;  %v1058_v40 = vpop.f32.mrf.mxu2 }
 0x1ed   : > { %3101 = vmatpush.msrb.mxu2 %v2936_v53 }
 0x1ee   : > { %3026 = vmatpush.msrb.mxu1 %v5877_v24  ;;  %3136 = vmatpush.msrb.mxu3 %v5891_v38  ;;  %v755_v5 = vadd.f32 %v754_v7, %v718_v4  ;;  %v1095_v24 = vpop.f32.mrf.mxu3 }
 0x1ef   : > { %3103 = vmatmul.f32.vlgmr.msrb.gmra.mxu2 %v5893_v33 }
 0x1f0   : > { %3028 = vmatpush.msrb.mxu1 %v5891_v38  ;;  %3138 = vmatpush.msrb.mxu3 %v5906_v50  ;;  %v796_v49 = vadd.f32 %v795_v63, %v755_v5  ;;  %v1136_v38 = vpop.f32.mrf.mxu0  ;;  %v1237_v59 = vpop.f32.mrf.mxu1 }
 0x1f1   : > { %3140 = vmatmul.f32.vlgmr.msrb.gmra.mxu3 %v5893_v33 }
 0x1f2   : > { %3030 = vmatpush.msrb.mxu1 %v5906_v50  ;;  %v897_v10 = vadd.f32 %v896_v31, %v796_v49 }
 0x1f3   : > { %3034 = vmatmul.f32.vlgmr.msrb.gmra.mxu1 %v2837_v15 }
 0x1f4   : > { %v951_v43 = vadd.f32 %v950_v47, %v897_v10  ;;  %v1291_v22 = vpop.f32.mrf.mxu2  ;;  %v3144_v10 = vld [vmem:[#allocation5] sm:$0xff] }
 0x1f6   : > { %v990_v51 = vadd.f32 %v989_v44, %v951_v43  ;;  %v1330_v8 = vpop.f32.mrf.mxu3 }
 0x1f8   : > { %v1059_v61 = vadd.f32 %v1058_v40, %v990_v51  ;;  %v1399_v28 = vpop.f32.mrf.mxu0  ;;  %v1436_v48 = vpop.f32.mrf.mxu1  ;;  %v3148_v40 = vsel %vm3146_vm0, %v3144_v10, 0 }
 0x1fa   : > { %v1096_v33 = vadd.f32 %v1095_v24, %v1059_v61 }
 0x1fc   : > { %v1137_v55 = vadd.f32 %v1136_v38, %v1096_v33  ;;  %v1477_v30 = vpop.f32.mrf.mxu2  ;;  %v3167_v38 = vand.u32 4294901760, %v3148_v40 }
 0x1fe   : > { %v1238_v50 = vadd.f32 %v1237_v59, %v1137_v55  ;;  %v1578_v12 = vpop.f32.mrf.mxu3  ;;  %v3168_v55 = vsub.f32 %v3148_v40, %v3167_v38 }
 0x200   : > { %v1292_v3 = vadd.f32 %v1291_v22, %v1238_v50  ;;  %v1632_v15 = vpop.f32.mrf.mxu0  ;;  %v1671_v18 = vpop.f32.mrf.mxu1 }
 0x202   : > { %v1331_v16 = vadd.f32 %v1330_v8, %v1292_v3  ;;  %v3169_v3 = vand.u32 4294901760, %v3168_v55 }
 0x204   : > { %v1400_v2 = vadd.f32 %v1399_v28, %v1331_v16  ;;  %v1740_v37 = vpop.f32.mrf.mxu2 }
 0x206   : > { %v1437_v41 = vadd.f32 %v1436_v48, %v1400_v2  ;;  %v1777_v52 = vpop.f32.mrf.mxu3  ;;  %v3170_v2 = vsub.f32 %v3168_v55, %v3169_v3 }
 0x208   : > { %v1478_v36 = vadd.f32 %v1477_v30, %v1437_v41  ;;  %v1818_v0 = vpop.f32.mrf.mxu0  ;;  %v1919_v57 = vpop.f32.mrf.mxu1 }
 0x20a   : > { %v1579_v14 = vadd.f32 %v1578_v12, %v1478_v36  ;;  %v3171_v12 = vand.u32 4294901760, %v3170_v2 }
 0x20c   : > { %v1633_v20 = vadd.f32 %v1632_v15, %v1579_v14  ;;  %v1973_v62 = vpop.f32.mrf.mxu2 }
 0x20e   : > { %v1672_v53 = vadd.f32 %v1671_v18, %v1633_v20  ;;  %v2012_v27 = vpop.f32.mrf.mxu3 }
 0x210   : > { %v1741_v11 = vadd.f32 %v1740_v37, %v1672_v53  ;;  %v2081_v29 = vpop.f32.mrf.mxu0  ;;  %v2118_v46 = vpop.f32.mrf.mxu1  ;;  %v3145_v37 = vld [vmem:[%s249_s25] sm:$0xff] }
 0x212   : > { %v1778_v45 = vadd.f32 %v1777_v52, %v1741_v11 }
 0x214   : > { %v1819_v39 = vadd.f32 %v1818_v0, %v1778_v45  ;;  %v2159_v13 = vpop.f32.mrf.mxu2 }
 0x216   : > { %v1920_v58 = vadd.f32 %v1919_v57, %v1819_v39  ;;  %v2260_v19 = vpop.f32.mrf.mxu3 }
 0x218   : > { %v1974_v25 = vadd.f32 %v1973_v62, %v1920_v58  ;;  %v2314_v35 = vpop.f32.mrf.mxu0  ;;  %v2353_v6 = vpop.f32.mrf.mxu1 }
 0x21a   : > { %v2013_v9 = vadd.f32 %v2012_v27, %v1974_v25 }
 0x21c   : > { %v2082_v54 = vadd.f32 %v2081_v29, %v2013_v9  ;;  %v2422_v23 = vpop.f32.mrf.mxu2 }
 0x21e   : > { %v2119_v34 = vadd.f32 %v2118_v46, %v2082_v54  ;;  %v2459_v56 = vpop.f32.mrf.mxu3 }
 0x220   : > { %v2160_v17 = vadd.f32 %v2159_v13, %v2119_v34 }
 0x222   : > { %v2261_v21 = vadd.f32 %v2260_v19, %v2160_v17 }
 0x224   : > { %v2315_v1 = vadd.f32 %v2314_v35, %v2261_v21  ;;  %v2500_v32 = vpop.f32.mrf.mxu0 }
 0x226   : > { %v2354_v42 = vadd.f32 %v2353_v6, %v2315_v1 }
 0x228   : > { %v2423_v26 = vadd.f32 %v2422_v23, %v2354_v42 }
 0x22a   : > { %v2460_v60 = vadd.f32 %v2459_v56, %v2423_v26 }
 0x22c   : > { %v2501_v7 = vadd.f32 %v2500_v32, %v2460_v60 }
 0x22e   : > { %v2601_v4 = vpop.f32.mrf.mxu1  ;;  %v2655_v63 = vpop.f32.mrf.mxu2 }
 0x22f   : > { %v2602_v5 = vadd.f32 %v2601_v4, %v2501_v7 }
 0x231   : > { %v2656_v49 = vadd.f32 %v2655_v63, %v2602_v5  ;;  %v2694_v31 = vpop.f32.mrf.mxu3 }
 0x233   : > { %v2695_v44 = vadd.f32 %v2694_v31, %v2656_v49 }
 0x246   : > { %v2763_v47 = vpop.f32.mrf.mxu0 }
 0x247   : > { %v2764_v51 = vadd.f32 %v2763_v47, %v2695_v44 }
 0x250   : > { %v2800_v43 = vpop.f32.mrf.mxu1  ;;  %v2841_v24 = vpop.f32.mrf.mxu2 }
 0x251   : > { %v2801_v61 = vadd.f32 %v2800_v43, %v2764_v51 }
 0x253   : > { %v2842_v33 = vadd.f32 %v2841_v24, %v2801_v61  ;;  %v2942_v59 = vpop.f32.mrf.mxu3 }
 0x255   : > { %v2943_v22 = vadd.f32 %v2942_v59, %v2842_v33 }
 0x268   : > { %v2996_v50 = vpop.f32.mrf.mxu0 }
 0x269   : > { %v2997_v8 = vadd.f32 %v2996_v50, %v2943_v22 }
 0x270   : > { %v3035_v28 = vpop.f32.mrf.mxu1 }
 0x271   : > { %v3036_v16 = vadd.f32 %v3035_v28, %v2997_v8 }
 0x272   : > { %v3104_v48 = vpop.f32.mrf.mxu2 }
 0x273   : > { %v3105_v41 = vadd.f32 %v3104_v48, %v3036_v16 }
 0x274   : > { %v3141_v30 = vpop.f32.mrf.mxu3 }
 0x275   : > { %v3142_v36 = vadd.f32 %v3141_v30, %v3105_v41 }
 0x277   : > { %v3165_v15 = vand.u32 4294901760, %v3142_v36 }
 0x279   : > { %v3192_v14 = vsub.f32 %v3142_v36, %v3165_v15  ;;  %3166 = vmatpush.msra.mxu0 %v3165_v15  ;;  %3242 = vmatpush.msra.mxu3 %v3165_v15 }
 0x27a   : > { %3172 = vmatmul.f32.vlgmr.msra.gmra.mxu0 %v3171_v12  ;;  %3246 = vmatmul.f32.vlgmr.msra.gmra.mxu3 %v3169_v3 }
 0x27b   : > { %v3193_v18 = vand.u32 4294901760, %v3192_v14  ;;  %3219 = vmatpush.msra.mxu2 %v3192_v14 }
 0x27c   : > { %3222 = vmatmul.f32.vlgmr.msra.gmra.mxu2 %v3168_v55 }
 0x27d   : > { %v3194_v20 = vsub.f32 %v3192_v14, %v3193_v18  ;;  %3268 = vmatpush.msrb.mxu0 %v3193_v18 }
 0x27f   : > { %v3195_v53 = vand.u32 4294901760, %v3194_v20 }
 0x281   : > { %3196 = vmatpush.msra.mxu1 %v3195_v53 }
 0x282   : > { %3270 = vmatmul.f32.vlgmr.msrb.gmra.mxu0 %v3167_v38  ;;  %3198 = vmatmul.f32.vlgmr.msra.gmra.mxu1 %v3167_v38 }
 0x283   : > { %3290 = vmatpush.msrb.mxu1 %v3165_v15 }
 0x28a   : > { %3292 = vmatmul.f32.vlgmr.msrb.gmra.mxu1 %v3167_v38 }
 0x2f7   : > { %v3173_v11 = vpop.f32.mrf.mxu0 }
 0x2f8   : > { %v3174_v52 = vadd.f32 %v3173_v11, %v3145_v37 }
 0x2fd   : > { %v3247_v39 = vpop.f32.mrf.mxu3 }
 0x2ff   : > { %v3199_v0 = vpop.f32.mrf.mxu1  ;;  %v3223_v45 = vpop.f32.mrf.mxu2 }
 0x300   : > { %v3200_v57 = vadd.f32 %v3199_v0, %v3174_v52  ;;  %v3271_v62 = vpop.f32.mrf.mxu0 }
 0x302   : > { %v3224_v58 = vadd.f32 %v3223_v45, %v3200_v57 }
 0x304   : > { %v3248_v25 = vadd.f32 %v3247_v39, %v3224_v58 }
 0x306   : > { %v3272_v27 = vadd.f32 %v3271_v62, %v3248_v25 }
 0x307   : > { %v3293_v29 = vpop.f32.mrf.mxu1 }
 0x308   : > { %v3294_v9 = vadd.f32 %v3293_v29, %v3272_v27 }
 0x30a   : > { %3296 = vst [vmem:[%s279_s22] sm:$0xff] %v3294_v9 }
 0x30b   : > { %3663 = shalt.err (!%p3660_p10)
}
 0x30c   : > { %3453 = dma.vmem_to_hbm [thread:$0]  (%p3794_p11), %s3311_s23, 128, %s3313_s14, %s3298_s19  }
 0x30d PF: > { %s3324_s21 = sand.u32 1, %s3698_s15   ;;  %p6327_p0 = scmp.ge.s32.totalorder %s3710_s18, 2 }
 0x30e   : > { %s3325_s24 = scalar_lea.sflag [#allocation4], %s3324_s21 }
 0x30f   : > { %p3470_p8 = pnand %p6327_p0, %p3798_p12 }
 0x311   : > { %p3471_p3 = pneg %p3470_p8 }
 0x313   : > { %3693 = dma.done.wait (%p3471_p3), %s3325_s24, 128  }
 0x314   : > { %3695 = vsyncadd (%p3471_p3), %s3325_s24, 4294967168  ;;  %s6328_s18 = sld [smem:[#allocation14_spill]]  ;;  %s6330_s15 = smov %s3702_s16 }
 0x315   : > { %s6329_s28 = sld [smem:[#allocation15_spill]]  ;;  %s6331_s16 = smov %s3706_s17 }
 0x31a   : > { %p16_p4 = scmp.ge.s32.totalorder %s6328_s18, 4  }
 0x31b   : > { %s6332_s17 = smov %s6329_s28 }
 0x31c   :  { %18 = sbr.rel (!%p16_p4) target bundleno = 8 (0x8), region = 99 }
 0x321   :  { %3331 = vsyncpa [#allocation3], 1 }
 0x322   :  { %3333 = vsyncpa [#allocation3 + $0x1], 1 }
 0x323   :  { %3334 = vsyncpa [#allocation6], 1 }
 0x324   :  { %3335 = vsyncpa [#allocation4], 1 }
 0x325   :  { %3337 = vsyncpa [#allocation4 + $0x1], 1 }

</bundles_post_ra>
